<compile_context>
chip_gen: v5e
topology: v5e:2x2
jax: 0.10.0
libtpu: 0.0.40
codegen_flags: <defaults>
</compile_context>

<pallas_src>
import jax
import jax.numpy as jnp
from jax import lax
from jax.experimental import pallas as pl
from jax.experimental.pallas import tpu as pltpu


# ---------------------------------------------------------------------------
# Kernel 1: fused im2col + conv matmul + folded-BN shift + ReLU
# ---------------------------------------------------------------------------
def _make_conv_kernel(kt, kh, kw, Cin, Wh, F):
    def kernel(*refs):
        phase_refs = refs[:4 * kt]       # ordered [it*4 + (ih%2)*2 + (iw%2)]
        w_ref = refs[4 * kt]             # (Cout, K) bf16, BN scale folded in
        shift_ref = refs[4 * kt + 1]     # (Cout, 1) f32
        out_ref = refs[4 * kt + 2]       # (1, 1, Cout, F)
        patch_ref = refs[4 * kt + 3]     # VMEM scratch (K, F)

        # Build the im2col patch matrix in VMEM: one unit-stride, lane-dense
        # copy per conv tap (no strided access, no HBM patches).
        idx = 0
        for it in range(kt):
            for ih in range(kh):
                for iw in range(kw):
                    r = phase_refs[it * 4 + (ih % 2) * 2 + (iw % 2)]
                    start = (ih // 2) * Wh + (iw // 2)
                    patch_ref[idx * Cin:(idx + 1) * Cin, :] = (
                        r[0, 0, :, start:start + F])
                    idx += 1

        # One MXU matmul for the whole (Cout, F) output plane of this step:
        # bf16 operands, f32 accumulation, then folded-BN shift + ReLU in f32.
        acc = jnp.dot(w_ref[...], patch_ref[...],
                      preferred_element_type=jnp.float32)
        y = jnp.maximum(acc + shift_ref[...], 0.0)
        out_ref[0, 0] = y.astype(out_ref.dtype)

    return kernel


def conv_bn_relu_fused(phases, wmat, shift, *, N, To, st, kt, Cin, Cout,
                       Hh, Wh, F, out_dtype):
    FF = Hh * Wh
    K = wmat.shape[1]

    operands = []
    in_specs = []
    # The same 4 phase arrays are passed once per temporal tap; the time tap is
    # selected purely through the BlockSpec index map (block size 1 in time).
    for it in range(kt):
        for p in range(4):
            operands.append(phases[p])
            in_specs.append(
                pl.BlockSpec((1, 1, Cin, FF),
                             lambda n, t, it=it: (n, t * st + it, 0, 0)))
    operands += [wmat, shift]
    in_specs += [
        pl.BlockSpec((Cout, K), lambda n, t: (0, 0)),
        pl.BlockSpec((Cout, 1), lambda n, t: (0, 0)),
    ]

    return pl.pallas_call(
        _make_conv_kernel(kt, 3, 3, Cin, Wh, F),
        out_shape=jax.ShapeDtypeStruct((N, To, Cout, F), out_dtype),
        grid=(N, To),
        in_specs=in_specs,
        out_specs=pl.BlockSpec((1, 1, Cout, F), lambda n, t: (n, t, 0, 0)),
        scratch_shapes=[pltpu.VMEM((K, F), wmat.dtype)],
        compiler_params=pltpu.CompilerParams(
            dimension_semantics=("parallel", "parallel")),
    )(*operands)


# ---------------------------------------------------------------------------
# Kernel 2: fused 3x3 / stride-2 / pad-1 spatial max-pool
# ---------------------------------------------------------------------------
def _make_pool_kernel(Hp, Cout, Wh, Wp):
    def kernel(x_ref, sel_ref, out_ref):
        x = x_ref[0, 0]                              # (2*Hp + 2, Cout, Wh)
        xr = x.reshape(Hp + 1, 2, Cout, Wh)          # outer-axis split (free)
        ev = xr[:, 0]                                # padded rows 0,2,...,2Hp
        od = xr[:, 1]                                # padded rows 1,3,...,2Hp+1
        # Pool row hp covers conv rows 2hp-1, 2hp, 2hp+1 == padded rows 2hp..2hp+2.
        hmax = jnp.maximum(jnp.maximum(ev[:Hp], od[:Hp]), ev[1:Hp + 1])
        # W taps w-1, w, w+1 with zero padding at the edges (values are >= 0
        # post-ReLU, so 0-padding is equivalent to excluding the tap).
        zcol = jnp.zeros((Hp, Cout, 1), hmax.dtype)
        left = jnp.concatenate([zcol, hmax[:, :, :Wh - 1]], axis=2)
        right = jnp.concatenate([hmax[:, :, 1:], zcol], axis=2)
        wmax = jnp.maximum(jnp.maximum(left, hmax), right)
        # Stride-2 column subsample as a tiny 0/1 selection matmul on the MXU
        # (avoids strided lane slicing).  The flat conv plane's one garbage
        # column per row hits only zero columns of `sel`, so it never leaks.
        flat = wmax.reshape(Hp * Cout, Wh)
        pooled = jnp.dot(flat, sel_ref[...], preferred_element_type=jnp.float32)
        out_ref[0, 0] = pooled.reshape(Hp, Cout, Wp)

    return kernel


def maxpool_fused(conv_rows, sel, *, N, To, Hp, Cout, Wh, Wp):
    Hop = 2 * Hp + 2
    return pl.pallas_call(
        _make_pool_kernel(Hp, Cout, Wh, Wp),
        out_shape=jax.ShapeDtypeStruct((N, To, Hp, Cout, Wp), jnp.float32),
        grid=(N, To),
        in_specs=[
            pl.BlockSpec((1, 1, Hop, Cout, Wh), lambda n, t: (n, t, 0, 0, 0)),
            pl.BlockSpec((Wh, Wp), lambda n, t: (0, 0)),
        ],
        out_specs=pl.BlockSpec((1, 1, Hp, Cout, Wp),
                               lambda n, t: (n, t, 0, 0, 0)),
        compiler_params=pltpu.CompilerParams(
            dimension_semantics=("parallel", "parallel")),
    )(conv_rows, sel)


# ---------------------------------------------------------------------------
# ShuffleNetStem forward
# ---------------------------------------------------------------------------
def shufflenet_stem_forward(x_ncdhw, conv_w, gamma, beta, running_mean,
                            running_var, kernel, stride, eps=1e-5,
                            compute_dtype=jnp.bfloat16):
    kt, kh, kw = kernel
    st, sh, sw = stride
    pt, ph, pw = kt // 2, kh // 2, kw // 2
    N, Cin, T, H, W = x_ncdhw.shape
    Cout = conv_w.shape[0]

    # Specialized to the ShuffleNet stem's 3x3 / stride-2 spatial conv and the
    # fixed MaxPool3d([1,3,3], stride [1,2,2], pad [0,1,1]).  Temporal kernel /
    # stride stay generic.
    assert (kh, kw) == (3, 3) and (sh, sw) == (2, 2), "specialized to 3x3/s2"
    assert H % 2 == 0 and W % 2 == 0

    Tp = T + 2 * pt
    To = (T + 2 * pt - kt) // st + 1
    Ho, Wo = H // 2, W // 2          # conv output spatial dims
    Hp, Wp = Ho // 2, Wo // 2        # pool output spatial dims
    assert Ho % 2 == 0 and Wo % 2 == 0

    Wh = Wo + 1                      # per-row width of every spatial phase
    Hh = Ho + 2                      # phase rows (+1 slack for the flat slices)
    F = Ho * Wh                      # flattened conv plane (lane-dense minor dim)

    # ---- glue: channel-major padded input, even/odd spatial phase split ----
    xt = jnp.transpose(x_ncdhw, (0, 2, 1, 3, 4)).astype(compute_dtype)  # (N,T,C,H,W)
    xp = jnp.pad(xt, ((0, 0), (pt, pt), (0, 0), (ph, ph), (pw, pw)))
    phases = []
    for a in (0, 1):
        for b in (0, 1):
            pab = xp[:, :, :, a::2, b::2]                      # (N,Tp,Cin,Ho+1,Wh)
            pab = jnp.pad(pab, ((0, 0), (0, 0), (0, 0),
                                (0, Hh - (Ho + 1)), (0, 0)))   # -> (.., Hh, Wh)
            phases.append(pab.reshape(N, Tp, Cin, Hh * Wh))

    # ---- glue: fold BN scale into conv weights, keep only the shift --------
    inv = (gamma / jnp.sqrt(running_var + eps)).astype(jnp.float32)
    wmat = jnp.transpose(conv_w.astype(jnp.float32),
                         (0, 2, 3, 4, 1)).reshape(Cout, kt * kh * kw * Cin)
    wmat = (wmat * inv[:, None]).astype(compute_dtype)         # scale folded
    shift = (beta - running_mean * inv).reshape(Cout, 1).astype(jnp.float32)

    # ---- kernel 1: fused im2col conv + BN shift + ReLU ---------------------
    conv_flat = conv_bn_relu_fused(
        phases, wmat, shift, N=N, To=To, st=st, kt=kt, Cin=Cin, Cout=Cout,
        Hh=Hh, Wh=Wh, F=F, out_dtype=compute_dtype)            # (N,To,Cout,F)

    # ---- glue: view the conv plane row-wise, move H outside the channels,
    #            add the pool's top/bottom halo rows (zeros, values are >= 0).
    conv5 = conv_flat.reshape(N, To, Cout, Ho, Wh)             # free reshape
    conv5 = jnp.transpose(conv5, (0, 1, 3, 2, 4))              # (N,To,Ho,Cout,Wh)
    conv5 = jnp.pad(conv5, ((0, 0), (0, 0), (1, 1), (0, 0), (0, 0)))

    # 0/1 selection matrix for the stride-2 column subsample.
    sel = (jnp.arange(Wh)[:, None] == 2 * jnp.arange(Wp)[None, :]
           ).astype(compute_dtype)

    # ---- kernel 2: fused 3x3 / stride-2 max pool ---------------------------
    pooled = maxpool_fused(conv5, sel, N=N, To=To, Hp=Hp, Cout=Cout,
                           Wh=Wh, Wp=Wp)                       # (N,To,Hp,Cout,Wp)

    return jnp.transpose(pooled, (0, 3, 1, 2, 4))              # (N,Cout,To,Hp,Wp)


# ---------------------------------------------------------------------------
# Pure-JAX reference (for correctness check)
# ---------------------------------------------------------------------------
def reference(x_ncdhw, conv_w, gamma, beta, mean, var, kernel, stride, eps=1e-5):
    pad = [(k // 2, k // 2) for k in kernel]
    y = lax.conv_general_dilated(
        x_ncdhw.astype(jnp.float32), conv_w.astype(jnp.float32),
        window_strides=tuple(stride), padding=pad,
        dimension_numbers=('NCDHW', 'OIDHW', 'NCDHW'))
    inv = gamma / jnp.sqrt(var + eps)
    s = inv.reshape(1, -1, 1, 1, 1)
    b = (beta - mean * inv).reshape(1, -1, 1, 1, 1)
    y = jnp.maximum(y * s + b, 0.0)
    y = lax.reduce_window(y, -jnp.inf, lax.max,
                          window_dimensions=(1, 1, 1, 3, 3),
                          window_strides=(1, 1, 1, 2, 2),
                          padding=((0, 0), (0, 0), (0, 0), (1, 1), (1, 1)))
    return y


if __name__ == "__main__":
    key = jax.random.PRNGKey(0)
    N, Cin, T, H, W = 2, 4, 8, 16, 16
    Cout = 32
    kernel = [3, 3, 3]
    stride = (1, 2, 2)

    k1, k2, k3, k4, k5, k6 = jax.random.split(key, 6)
    x = jax.random.normal(k1, (N, Cin, T, H, W), dtype=jnp.float32)
    conv_w = jax.random.normal(k2, (Cout, Cin, *kernel), dtype=jnp.float32) * 0.1
    gamma = jax.random.uniform(k3, (Cout,), minval=0.5, maxval=1.5)
    beta = jax.random.normal(k4, (Cout,)) * 0.1
    running_mean = jax.random.normal(k5, (Cout,)) * 0.1
    running_var = jax.random.uniform(k6, (Cout,), minval=0.5, maxval=1.5)

    out = shufflenet_stem_forward(x, conv_w, gamma, beta, running_mean,
                                  running_var, kernel, stride)
    out = jax.block_until_ready(out)

    ref = reference(x, conv_w, gamma, beta, running_mean, running_var,
                    kernel, stride)
    assert out.shape == ref.shape, (out.shape, ref.shape)
    # bf16 matmul operands + bf16 conv intermediate => ~1e-2 scale differences
    # vs. the f32 reference; tolerance chosen accordingly.
    assert jnp.allclose(out, ref, rtol=3e-2, atol=3e-2), float(
        jnp.max(jnp.abs(out - ref)))
    print("KERNEL_OK")
</pallas_src>

<mosaic_0001>
module attributes {stable_mosaic.version = 11 : i64} {
  func.func @kernel(%arg0: i32, %arg1: i32, %arg2: memref<1x1x4x90xbf16, #tpu.memory_space<vmem>>, %arg3: memref<1x1x4x90xbf16, #tpu.memory_space<vmem>>, %arg4: memref<1x1x4x90xbf16, #tpu.memory_space<vmem>>, %arg5: memref<1x1x4x90xbf16, #tpu.memory_space<vmem>>, %arg6: memref<1x1x4x90xbf16, #tpu.memory_space<vmem>>, %arg7: memref<1x1x4x90xbf16, #tpu.memory_space<vmem>>, %arg8: memref<1x1x4x90xbf16, #tpu.memory_space<vmem>>, %arg9: memref<1x1x4x90xbf16, #tpu.memory_space<vmem>>, %arg10: memref<1x1x4x90xbf16, #tpu.memory_space<vmem>>, %arg11: memref<1x1x4x90xbf16, #tpu.memory_space<vmem>>, %arg12: memref<1x1x4x90xbf16, #tpu.memory_space<vmem>>, %arg13: memref<1x1x4x90xbf16, #tpu.memory_space<vmem>>, %arg14: memref<32x108xbf16, #tpu.memory_space<vmem>>, %arg15: memref<32x1xf32, #tpu.memory_space<vmem>>, %arg16: memref<1x1x32x72xbf16, #tpu.memory_space<vmem>>, %arg17: memref<108x72xbf16, #tpu.memory_space<vmem>>) attributes {dimension_semantics = [#tpu.dimension_semantics<parallel>, #tpu.dimension_semantics<parallel>], iteration_bounds = array<i64: 2, 8>, scalar_prefetch = 0 : i64, scratch_operands = 1 : i64, tpu.core_type = #tpu.core_type<tc>, window_params = [{transform_indices = @transform_0, window_bounds = array<i64: 1, 1, 4, 90>}, {transform_indices = @transform_1, window_bounds = array<i64: 1, 1, 4, 90>}, {transform_indices = @transform_2, window_bounds = array<i64: 1, 1, 4, 90>}, {transform_indices = @transform_3, window_bounds = array<i64: 1, 1, 4, 90>}, {transform_indices = @transform_4, window_bounds = array<i64: 1, 1, 4, 90>}, {transform_indices = @transform_5, window_bounds = array<i64: 1, 1, 4, 90>}, {transform_indices = @transform_6, window_bounds = array<i64: 1, 1, 4, 90>}, {transform_indices = @transform_7, window_bounds = array<i64: 1, 1, 4, 90>}, {transform_indices = @transform_8, window_bounds = array<i64: 1, 1, 4, 90>}, {transform_indices = @transform_9, window_bounds = array<i64: 1, 1, 4, 90>}, {transform_indices = @transform_10, window_bounds = array<i64: 1, 1, 4, 90>}, {transform_indices = @transform_11, window_bounds = array<i64: 1, 1, 4, 90>}, {pipeline_mode = #tpu.pipeline_mode<synchronous>, transform_indices = @transform_12, window_bounds = array<i64: 32, 108>}, {pipeline_mode = #tpu.pipeline_mode<synchronous>, transform_indices = @transform_13, window_bounds = array<i64: 32, 1>}, {transform_indices = @transform_14, window_bounds = array<i64: 1, 1, 32, 72>}]} {
    %c0 = arith.constant 0 : index
    %c0_0 = arith.constant 0 : index
    %c0_1 = arith.constant 0 : index
    %c0_2 = arith.constant 0 : index
    %0 = vector.load %arg2[%c0, %c0_0, %c0_1, %c0_2] : memref<1x1x4x90xbf16, #tpu.memory_space<vmem>>, vector<1x1x4x72xbf16>
    %1 = vector.shape_cast %0 : vector<1x1x4x72xbf16> to vector<4x72xbf16>
    %c0_3 = arith.constant 0 : index
    %c0_4 = arith.constant 0 : index
    %2 = vector.load %arg17[%c0_3, %c0_4] : memref<108x72xbf16, #tpu.memory_space<vmem>>, vector<4x72xbf16>
    tpu.vector_store %arg17[%c0_3, %c0_4], %1 {strides = array<i32>} : memref<108x72xbf16, #tpu.memory_space<vmem>>, vector<4x72xbf16>,
    %c0_5 = arith.constant 0 : index
    %c0_6 = arith.constant 0 : index
    %c0_7 = arith.constant 0 : index
    %c0_8 = arith.constant 0 : index
    %3 = vector.load %arg3[%c0_5, %c0_6, %c0_7, %c0_8] : memref<1x1x4x90xbf16, #tpu.memory_space<vmem>>, vector<1x1x4x72xbf16>
    %4 = vector.shape_cast %3 : vector<1x1x4x72xbf16> to vector<4x72xbf16>
    %c4 = arith.constant 4 : index
    %c0_9 = arith.constant 0 : index
    %5 = vector.load %arg17[%c4, %c0_9] : memref<108x72xbf16, #tpu.memory_space<vmem>>, vector<4x72xbf16>
    tpu.vector_store %arg17[%c4, %c0_9], %4 {strides = array<i32>} : memref<108x72xbf16, #tpu.memory_space<vmem>>, vector<4x72xbf16>,
    %c0_10 = arith.constant 0 : index
    %c0_11 = arith.constant 0 : index
    %c0_12 = arith.constant 0 : index
    %c1 = arith.constant 1 : index
    %6 = vector.load %arg2[%c0_10, %c0_11, %c0_12, %c1] : memref<1x1x4x90xbf16, #tpu.memory_space<vmem>>, vector<1x1x4x72xbf16>
    %7 = vector.shape_cast %6 : vector<1x1x4x72xbf16> to vector<4x72xbf16>
    %c8 = arith.constant 8 : index
    %c0_13 = arith.constant 0 : index
    %8 = vector.load %arg17[%c8, %c0_13] : memref<108x72xbf16, #tpu.memory_space<vmem>>, vector<4x72xbf16>
    tpu.vector_store %arg17[%c8, %c0_13], %7 {strides = array<i32>} : memref<108x72xbf16, #tpu.memory_space<vmem>>, vector<4x72xbf16>,
    %c0_14 = arith.constant 0 : index
    %c0_15 = arith.constant 0 : index
    %c0_16 = arith.constant 0 : index
    %c0_17 = arith.constant 0 : index
    %9 = vector.load %arg4[%c0_14, %c0_15, %c0_16, %c0_17] : memref<1x1x4x90xbf16, #tpu.memory_space<vmem>>, vector<1x1x4x72xbf16>
    %10 = vector.shape_cast %9 : vector<1x1x4x72xbf16> to vector<4x72xbf16>
    %c12 = arith.constant 12 : index
    %c0_18 = arith.constant 0 : index
    %11 = vector.load %arg17[%c12, %c0_18] : memref<108x72xbf16, #tpu.memory_space<vmem>>, vector<4x72xbf16>
    tpu.vector_store %arg17[%c12, %c0_18], %10 {strides = array<i32>} : memref<108x72xbf16, #tpu.memory_space<vmem>>, vector<4x72xbf16>,
    %c0_19 = arith.constant 0 : index
    %c0_20 = arith.constant 0 : index
    %c0_21 = arith.constant 0 : index
    %c0_22 = arith.constant 0 : index
    %12 = vector.load %arg5[%c0_19, %c0_20, %c0_21, %c0_22] : memref<1x1x4x90xbf16, #tpu.memory_space<vmem>>, vector<1x1x4x72xbf16>
    %13 = vector.shape_cast %12 : vector<1x1x4x72xbf16> to vector<4x72xbf16>
    %c16 = arith.constant 16 : index
    %c0_23 = arith.constant 0 : index
    %14 = vector.load %arg17[%c16, %c0_23] : memref<108x72xbf16, #tpu.memory_space<vmem>>, vector<4x72xbf16>
    tpu.vector_store %arg17[%c16, %c0_23], %13 {strides = array<i32>} : memref<108x72xbf16, #tpu.memory_space<vmem>>, vector<4x72xbf16>,
    %c0_24 = arith.constant 0 : index
    %c0_25 = arith.constant 0 : index
    %c0_26 = arith.constant 0 : index
    %c1_27 = arith.constant 1 : index
    %15 = vector.load %arg4[%c0_24, %c0_25, %c0_26, %c1_27] : memref<1x1x4x90xbf16, #tpu.memory_space<vmem>>, vector<1x1x4x72xbf16>
    %16 = vector.shape_cast %15 : vector<1x1x4x72xbf16> to vector<4x72xbf16>
    %c20 = arith.constant 20 : index
    %c0_28 = arith.constant 0 : index
    %17 = vector.load %arg17[%c20, %c0_28] : memref<108x72xbf16, #tpu.memory_space<vmem>>, vector<4x72xbf16>
    tpu.vector_store %arg17[%c20, %c0_28], %16 {strides = array<i32>} : memref<108x72xbf16, #tpu.memory_space<vmem>>, vector<4x72xbf16>,
    %c0_29 = arith.constant 0 : index
    %c0_30 = arith.constant 0 : index
    %c0_31 = arith.constant 0 : index
    %c9 = arith.constant 9 : index
    %18 = vector.load %arg2[%c0_29, %c0_30, %c0_31, %c9] : memref<1x1x4x90xbf16, #tpu.memory_space<vmem>>, vector<1x1x4x72xbf16>
    %19 = vector.shape_cast %18 : vector<1x1x4x72xbf16> to vector<4x72xbf16>
    %c24 = arith.constant 24 : index
    %c0_32 = arith.constant 0 : index
    %20 = vector.load %arg17[%c24, %c0_32] : memref<108x72xbf16, #tpu.memory_space<vmem>>, vector<4x72xbf16>
    tpu.vector_store %arg17[%c24, %c0_32], %19 {strides = array<i32>} : memref<108x72xbf16, #tpu.memory_space<vmem>>, vector<4x72xbf16>,
    %c0_33 = arith.constant 0 : index
    %c0_34 = arith.constant 0 : index
    %c0_35 = arith.constant 0 : index
    %c9_36 = arith.constant 9 : index
    %21 = vector.load %arg3[%c0_33, %c0_34, %c0_35, %c9_36] : memref<1x1x4x90xbf16, #tpu.memory_space<vmem>>, vector<1x1x4x72xbf16>
    %22 = vector.shape_cast %21 : vector<1x1x4x72xbf16> to vector<4x72xbf16>
    %c28 = arith.constant 28 : index
    %c0_37 = arith.constant 0 : index
    %23 = vector.load %arg17[%c28, %c0_37] : memref<108x72xbf16, #tpu.memory_space<vmem>>, vector<4x72xbf16>
    tpu.vector_store %arg17[%c28, %c0_37], %22 {strides = array<i32>} : memref<108x72xbf16, #tpu.memory_space<vmem>>, vector<4x72xbf16>,
    %c0_38 = arith.constant 0 : index
    %c0_39 = arith.constant 0 : index
    %c0_40 = arith.constant 0 : index
    %c10 = arith.constant 10 : index
    %24 = vector.load %arg2[%c0_38, %c0_39, %c0_40, %c10] : memref<1x1x4x90xbf16, #tpu.memory_space<vmem>>, vector<1x1x4x72xbf16>
    %25 = vector.shape_cast %24 : vector<1x1x4x72xbf16> to vector<4x72xbf16>
    %c32 = arith.constant 32 : index
    %c0_41 = arith.constant 0 : index
    %26 = vector.load %arg17[%c32, %c0_41] : memref<108x72xbf16, #tpu.memory_space<vmem>>, vector<4x72xbf16>
    tpu.vector_store %arg17[%c32, %c0_41], %25 {strides = array<i32>} : memref<108x72xbf16, #tpu.memory_space<vmem>>, vector<4x72xbf16>,
    %c0_42 = arith.constant 0 : index
    %c0_43 = arith.constant 0 : index
    %c0_44 = arith.constant 0 : index
    %c0_45 = arith.constant 0 : index
    %27 = vector.load %arg6[%c0_42, %c0_43, %c0_44, %c0_45] : memref<1x1x4x90xbf16, #tpu.memory_space<vmem>>, vector<1x1x4x72xbf16>
    %28 = vector.shape_cast %27 : vector<1x1x4x72xbf16> to vector<4x72xbf16>
    %c36 = arith.constant 36 : index
    %c0_46 = arith.constant 0 : index
    %29 = vector.load %arg17[%c36, %c0_46] : memref<108x72xbf16, #tpu.memory_space<vmem>>, vector<4x72xbf16>
    tpu.vector_store %arg17[%c36, %c0_46], %28 {strides = array<i32>} : memref<108x72xbf16, #tpu.memory_space<vmem>>, vector<4x72xbf16>,
    %c0_47 = arith.constant 0 : index
    %c0_48 = arith.constant 0 : index
    %c0_49 = arith.constant 0 : index
    %c0_50 = arith.constant 0 : index
    %30 = vector.load %arg7[%c0_47, %c0_48, %c0_49, %c0_50] : memref<1x1x4x90xbf16, #tpu.memory_space<vmem>>, vector<1x1x4x72xbf16>
    %31 = vector.shape_cast %30 : vector<1x1x4x72xbf16> to vector<4x72xbf16>
    %c40 = arith.constant 40 : index
    %c0_51 = arith.constant 0 : index
    %32 = vector.load %arg17[%c40, %c0_51] : memref<108x72xbf16, #tpu.memory_space<vmem>>, vector<4x72xbf16>
    tpu.vector_store %arg17[%c40, %c0_51], %31 {strides = array<i32>} : memref<108x72xbf16, #tpu.memory_space<vmem>>, vector<4x72xbf16>,
    %c0_52 = arith.constant 0 : index
    %c0_53 = arith.constant 0 : index
    %c0_54 = arith.constant 0 : index
    %c1_55 = arith.constant 1 : index
    %33 = vector.load %arg6[%c0_52, %c0_53, %c0_54, %c1_55] : memref<1x1x4x90xbf16, #tpu.memory_space<vmem>>, vector<1x1x4x72xbf16>
    %34 = vector.shape_cast %33 : vector<1x1x4x72xbf16> to vector<4x72xbf16>
    %c44 = arith.constant 44 : index
    %c0_56 = arith.constant 0 : index
    %35 = vector.load %arg17[%c44, %c0_56] : memref<108x72xbf16, #tpu.memory_space<vmem>>, vector<4x72xbf16>
    tpu.vector_store %arg17[%c44, %c0_56], %34 {strides = array<i32>} : memref<108x72xbf16, #tpu.memory_space<vmem>>, vector<4x72xbf16>,
    %c0_57 = arith.constant 0 : index
    %c0_58 = arith.constant 0 : index
    %c0_59 = arith.constant 0 : index
    %c0_60 = arith.constant 0 : index
    %36 = vector.load %arg8[%c0_57, %c0_58, %c0_59, %c0_60] : memref<1x1x4x90xbf16, #tpu.memory_space<vmem>>, vector<1x1x4x72xbf16>
    %37 = vector.shape_cast %36 : vector<1x1x4x72xbf16> to vector<4x72xbf16>
    %c48 = arith.constant 48 : index
    %c0_61 = arith.constant 0 : index
    %38 = vector.load %arg17[%c48, %c0_61] : memref<108x72xbf16, #tpu.memory_space<vmem>>, vector<4x72xbf16>
    tpu.vector_store %arg17[%c48, %c0_61], %37 {strides = array<i32>} : memref<108x72xbf16, #tpu.memory_space<vmem>>, vector<4x72xbf16>,
    %c0_62 = arith.constant 0 : index
    %c0_63 = arith.constant 0 : index
    %c0_64 = arith.constant 0 : index
    %c0_65 = arith.constant 0 : index
    %39 = vector.load %arg9[%c0_62, %c0_63, %c0_64, %c0_65] : memref<1x1x4x90xbf16, #tpu.memory_space<vmem>>, vector<1x1x4x72xbf16>
    %40 = vector.shape_cast %39 : vector<1x1x4x72xbf16> to vector<4x72xbf16>
    %c52 = arith.constant 52 : index
    %c0_66 = arith.constant 0 : index
    %41 = vector.load %arg17[%c52, %c0_66] : memref<108x72xbf16, #tpu.memory_space<vmem>>, vector<4x72xbf16>
    tpu.vector_store %arg17[%c52, %c0_66], %40 {strides = array<i32>} : memref<108x72xbf16, #tpu.memory_space<vmem>>, vector<4x72xbf16>,
    %c0_67 = arith.constant 0 : index
    %c0_68 = arith.constant 0 : index
    %c0_69 = arith.constant 0 : index
    %c1_70 = arith.constant 1 : index
    %42 = vector.load %arg8[%c0_67, %c0_68, %c0_69, %c1_70] : memref<1x1x4x90xbf16, #tpu.memory_space<vmem>>, vector<1x1x4x72xbf16>
    %43 = vector.shape_cast %42 : vector<1x1x4x72xbf16> to vector<4x72xbf16>
    %c56 = arith.constant 56 : index
    %c0_71 = arith.constant 0 : index
    %44 = vector.load %arg17[%c56, %c0_71] : memref<108x72xbf16, #tpu.memory_space<vmem>>, vector<4x72xbf16>
    tpu.vector_store %arg17[%c56, %c0_71], %43 {strides = array<i32>} : memref<108x72xbf16, #tpu.memory_space<vmem>>, vector<4x72xbf16>,
    %c0_72 = arith.constant 0 : index
    %c0_73 = arith.constant 0 : index
    %c0_74 = arith.constant 0 : index
    %c9_75 = arith.constant 9 : index
    %45 = vector.load %arg6[%c0_72, %c0_73, %c0_74, %c9_75] : memref<1x1x4x90xbf16, #tpu.memory_space<vmem>>, vector<1x1x4x72xbf16>
    %46 = vector.shape_cast %45 : vector<1x1x4x72xbf16> to vector<4x72xbf16>
    %c60 = arith.constant 60 : index
    %c0_76 = arith.constant 0 : index
    %47 = vector.load %arg17[%c60, %c0_76] : memref<108x72xbf16, #tpu.memory_space<vmem>>, vector<4x72xbf16>
    tpu.vector_store %arg17[%c60, %c0_76], %46 {strides = array<i32>} : memref<108x72xbf16, #tpu.memory_space<vmem>>, vector<4x72xbf16>,
    %c0_77 = arith.constant 0 : index
    %c0_78 = arith.constant 0 : index
    %c0_79 = arith.constant 0 : index
    %c9_80 = arith.constant 9 : index
    %48 = vector.load %arg7[%c0_77, %c0_78, %c0_79, %c9_80] : memref<1x1x4x90xbf16, #tpu.memory_space<vmem>>, vector<1x1x4x72xbf16>
    %49 = vector.shape_cast %48 : vector<1x1x4x72xbf16> to vector<4x72xbf16>
    %c64 = arith.constant 64 : index
    %c0_81 = arith.constant 0 : index
    %50 = vector.load %arg17[%c64, %c0_81] : memref<108x72xbf16, #tpu.memory_space<vmem>>, vector<4x72xbf16>
    tpu.vector_store %arg17[%c64, %c0_81], %49 {strides = array<i32>} : memref<108x72xbf16, #tpu.memory_space<vmem>>, vector<4x72xbf16>,
    %c0_82 = arith.constant 0 : index
    %c0_83 = arith.constant 0 : index
    %c0_84 = arith.constant 0 : index
    %c10_85 = arith.constant 10 : index
    %51 = vector.load %arg6[%c0_82, %c0_83, %c0_84, %c10_85] : memref<1x1x4x90xbf16, #tpu.memory_space<vmem>>, vector<1x1x4x72xbf16>
    %52 = vector.shape_cast %51 : vector<1x1x4x72xbf16> to vector<4x72xbf16>
    %c68 = arith.constant 68 : index
    %c0_86 = arith.constant 0 : index
    %53 = vector.load %arg17[%c68, %c0_86] : memref<108x72xbf16, #tpu.memory_space<vmem>>, vector<4x72xbf16>
    tpu.vector_store %arg17[%c68, %c0_86], %52 {strides = array<i32>} : memref<108x72xbf16, #tpu.memory_space<vmem>>, vector<4x72xbf16>,
    %c0_87 = arith.constant 0 : index
    %c0_88 = arith.constant 0 : index
    %c0_89 = arith.constant 0 : index
    %c0_90 = arith.constant 0 : index
    %54 = vector.load %arg10[%c0_87, %c0_88, %c0_89, %c0_90] : memref<1x1x4x90xbf16, #tpu.memory_space<vmem>>, vector<1x1x4x72xbf16>
    %55 = vector.shape_cast %54 : vector<1x1x4x72xbf16> to vector<4x72xbf16>
    %c72 = arith.constant 72 : index
    %c0_91 = arith.constant 0 : index
    %56 = vector.load %arg17[%c72, %c0_91] : memref<108x72xbf16, #tpu.memory_space<vmem>>, vector<4x72xbf16>
    tpu.vector_store %arg17[%c72, %c0_91], %55 {strides = array<i32>} : memref<108x72xbf16, #tpu.memory_space<vmem>>, vector<4x72xbf16>,
    %c0_92 = arith.constant 0 : index
    %c0_93 = arith.constant 0 : index
    %c0_94 = arith.constant 0 : index
    %c0_95 = arith.constant 0 : index
    %57 = vector.load %arg11[%c0_92, %c0_93, %c0_94, %c0_95] : memref<1x1x4x90xbf16, #tpu.memory_space<vmem>>, vector<1x1x4x72xbf16>
    %58 = vector.shape_cast %57 : vector<1x1x4x72xbf16> to vector<4x72xbf16>
    %c76 = arith.constant 76 : index
    %c0_96 = arith.constant 0 : index
    %59 = vector.load %arg17[%c76, %c0_96] : memref<108x72xbf16, #tpu.memory_space<vmem>>, vector<4x72xbf16>
    tpu.vector_store %arg17[%c76, %c0_96], %58 {strides = array<i32>} : memref<108x72xbf16, #tpu.memory_space<vmem>>, vector<4x72xbf16>,
    %c0_97 = arith.constant 0 : index
    %c0_98 = arith.constant 0 : index
    %c0_99 = arith.constant 0 : index
    %c1_100 = arith.constant 1 : index
    %60 = vector.load %arg10[%c0_97, %c0_98, %c0_99, %c1_100] : memref<1x1x4x90xbf16, #tpu.memory_space<vmem>>, vector<1x1x4x72xbf16>
    %61 = vector.shape_cast %60 : vector<1x1x4x72xbf16> to vector<4x72xbf16>
    %c80 = arith.constant 80 : index
    %c0_101 = arith.constant 0 : index
    %62 = vector.load %arg17[%c80, %c0_101] : memref<108x72xbf16, #tpu.memory_space<vmem>>, vector<4x72xbf16>
    tpu.vector_store %arg17[%c80, %c0_101], %61 {strides = array<i32>} : memref<108x72xbf16, #tpu.memory_space<vmem>>, vector<4x72xbf16>,
    %c0_102 = arith.constant 0 : index
    %c0_103 = arith.constant 0 : index
    %c0_104 = arith.constant 0 : index
    %c0_105 = arith.constant 0 : index
    %63 = vector.load %arg12[%c0_102, %c0_103, %c0_104, %c0_105] : memref<1x1x4x90xbf16, #tpu.memory_space<vmem>>, vector<1x1x4x72xbf16>
    %64 = vector.shape_cast %63 : vector<1x1x4x72xbf16> to vector<4x72xbf16>
    %c84 = arith.constant 84 : index
    %c0_106 = arith.constant 0 : index
    %65 = vector.load %arg17[%c84, %c0_106] : memref<108x72xbf16, #tpu.memory_space<vmem>>, vector<4x72xbf16>
    tpu.vector_store %arg17[%c84, %c0_106], %64 {strides = array<i32>} : memref<108x72xbf16, #tpu.memory_space<vmem>>, vector<4x72xbf16>,
    %c0_107 = arith.constant 0 : index
    %c0_108 = arith.constant 0 : index
    %c0_109 = arith.constant 0 : index
    %c0_110 = arith.constant 0 : index
    %66 = vector.load %arg13[%c0_107, %c0_108, %c0_109, %c0_110] : memref<1x1x4x90xbf16, #tpu.memory_space<vmem>>, vector<1x1x4x72xbf16>
    %67 = vector.shape_cast %66 : vector<1x1x4x72xbf16> to vector<4x72xbf16>
    %c88 = arith.constant 88 : index
    %c0_111 = arith.constant 0 : index
    %68 = vector.load %arg17[%c88, %c0_111] : memref<108x72xbf16, #tpu.memory_space<vmem>>, vector<4x72xbf16>
    tpu.vector_store %arg17[%c88, %c0_111], %67 {strides = array<i32>} : memref<108x72xbf16, #tpu.memory_space<vmem>>, vector<4x72xbf16>,
    %c0_112 = arith.constant 0 : index
    %c0_113 = arith.constant 0 : index
    %c0_114 = arith.constant 0 : index
    %c1_115 = arith.constant 1 : index
    %69 = vector.load %arg12[%c0_112, %c0_113, %c0_114, %c1_115] : memref<1x1x4x90xbf16, #tpu.memory_space<vmem>>, vector<1x1x4x72xbf16>
    %70 = vector.shape_cast %69 : vector<1x1x4x72xbf16> to vector<4x72xbf16>
    %c92 = arith.constant 92 : index
    %c0_116 = arith.constant 0 : index
    %71 = vector.load %arg17[%c92, %c0_116] : memref<108x72xbf16, #tpu.memory_space<vmem>>, vector<4x72xbf16>
    tpu.vector_store %arg17[%c92, %c0_116], %70 {strides = array<i32>} : memref<108x72xbf16, #tpu.memory_space<vmem>>, vector<4x72xbf16>,
    %c0_117 = arith.constant 0 : index
    %c0_118 = arith.constant 0 : index
    %c0_119 = arith.constant 0 : index
    %c9_120 = arith.constant 9 : index
    %72 = vector.load %arg10[%c0_117, %c0_118, %c0_119, %c9_120] : memref<1x1x4x90xbf16, #tpu.memory_space<vmem>>, vector<1x1x4x72xbf16>
    %73 = vector.shape_cast %72 : vector<1x1x4x72xbf16> to vector<4x72xbf16>
    %c96 = arith.constant 96 : index
    %c0_121 = arith.constant 0 : index
    %74 = vector.load %arg17[%c96, %c0_121] : memref<108x72xbf16, #tpu.memory_space<vmem>>, vector<4x72xbf16>
    tpu.vector_store %arg17[%c96, %c0_121], %73 {strides = array<i32>} : memref<108x72xbf16, #tpu.memory_space<vmem>>, vector<4x72xbf16>,
    %c0_122 = arith.constant 0 : index
    %c0_123 = arith.constant 0 : index
    %c0_124 = arith.constant 0 : index
    %c9_125 = arith.constant 9 : index
    %75 = vector.load %arg11[%c0_122, %c0_123, %c0_124, %c9_125] : memref<1x1x4x90xbf16, #tpu.memory_space<vmem>>, vector<1x1x4x72xbf16>
    %76 = vector.shape_cast %75 : vector<1x1x4x72xbf16> to vector<4x72xbf16>
    %c100 = arith.constant 100 : index
    %c0_126 = arith.constant 0 : index
    %77 = vector.load %arg17[%c100, %c0_126] : memref<108x72xbf16, #tpu.memory_space<vmem>>, vector<4x72xbf16>
    tpu.vector_store %arg17[%c100, %c0_126], %76 {strides = array<i32>} : memref<108x72xbf16, #tpu.memory_space<vmem>>, vector<4x72xbf16>,
    %c0_127 = arith.constant 0 : index
    %c0_128 = arith.constant 0 : index
    %c0_129 = arith.constant 0 : index
    %c10_130 = arith.constant 10 : index
    %78 = vector.load %arg10[%c0_127, %c0_128, %c0_129, %c10_130] : memref<1x1x4x90xbf16, #tpu.memory_space<vmem>>, vector<1x1x4x72xbf16>
    %79 = vector.shape_cast %78 : vector<1x1x4x72xbf16> to vector<4x72xbf16>
    %c104 = arith.constant 104 : index
    %c0_131 = arith.constant 0 : index
    %80 = vector.load %arg17[%c104, %c0_131] : memref<108x72xbf16, #tpu.memory_space<vmem>>, vector<4x72xbf16>
    tpu.vector_store %arg17[%c104, %c0_131], %79 {strides = array<i32>} : memref<108x72xbf16, #tpu.memory_space<vmem>>, vector<4x72xbf16>,
    %c0_132 = arith.constant 0 : index
    %c0_133 = arith.constant 0 : index
    %81 = vector.load %arg14[%c0_132, %c0_133] : memref<32x108xbf16, #tpu.memory_space<vmem>>, vector<32x108xbf16>
    %c0_134 = arith.constant 0 : index
    %c0_135 = arith.constant 0 : index
    %82 = vector.load %arg17[%c0_134, %c0_135] : memref<108x72xbf16, #tpu.memory_space<vmem>>, vector<108x72xbf16>
    %cst = arith.constant dense<0.000000e+00> : vector<32x72xf32>
    %83 = tpu.matmul %81, %82, %cst {dimension_numbers = #tpu.dot_dimension_numbers<[1], [0], [0], [1], [0, 0, 1, 1], [], []>} : vector<32x108xbf16>, vector<108x72xbf16>, vector<32x72xf32> -> vector<32x72xf32>
    %c0_136 = arith.constant 0 : index
    %c0_137 = arith.constant 0 : index
    %84 = vector.load %arg15[%c0_136, %c0_137] : memref<32x1xf32, #tpu.memory_space<vmem>>, vector<32x1xf32>
    %85 = vector.broadcast %84 : vector<32x1xf32> to vector<32x72xf32>
    %86 = arith.addf %83, %85 : vector<32x72xf32>
    %cst_138 = arith.constant 0.000000e+00 : f32
    %87 = vector.broadcast %cst_138 : f32 to vector<32x72xf32>
    %88 = arith.maximumf %86, %87 : vector<32x72xf32>
    %89 = arith.truncf %88 : vector<32x72xf32> to vector<32x72xbf16>
    %c0_139 = arith.constant 0 : index
    %c0_140 = arith.constant 0 : index
    %c0_141 = arith.constant 0 : index
    %c0_142 = arith.constant 0 : index
    %90 = vector.load %arg16[%c0_139, %c0_140, %c0_141, %c0_142] : memref<1x1x32x72xbf16, #tpu.memory_space<vmem>>, vector<1x1x32x72xbf16>
    %91 = vector.shape_cast %90 : vector<1x1x32x72xbf16> to vector<32x72xbf16>
    %92 = vector.shape_cast %89 : vector<32x72xbf16> to vector<1x1x32x72xbf16>
    tpu.vector_store %arg16[%c0_139, %c0_140, %c0_141, %c0_142], %92 {strides = array<i32>} : memref<1x1x32x72xbf16, #tpu.memory_space<vmem>>, vector<1x1x32x72xbf16>,
    return
  }
  func.func @transform_0(%arg0: i32, %arg1: i32) -> (i32, i32, i32, i32) {
    %c1_i32 = arith.constant 1 : i32
    %0 = arith.muli %arg1, %c1_i32 : i32
    %c0_i32 = arith.constant 0 : i32
    %1 = arith.addi %0, %c0_i32 : i32
    %c0_i32_0 = arith.constant 0 : i32
    %c0_i32_1 = arith.constant 0 : i32
    %c0_i32_2 = arith.constant 0 : i32
    return %arg0, %1, %c0_i32_0, %c0_i32_1 : i32, i32, i32, i32
  }
  func.func @transform_1(%arg0: i32, %arg1: i32) -> (i32, i32, i32, i32) {
    %c1_i32 = arith.constant 1 : i32
    %0 = arith.muli %arg1, %c1_i32 : i32
    %c0_i32 = arith.constant 0 : i32
    %1 = arith.addi %0, %c0_i32 : i32
    %c0_i32_0 = arith.constant 0 : i32
    %c0_i32_1 = arith.constant 0 : i32
    %c0_i32_2 = arith.constant 0 : i32
    return %arg0, %1, %c0_i32_0, %c0_i32_1 : i32, i32, i32, i32
  }
  func.func @transform_2(%arg0: i32, %arg1: i32) -> (i32, i32, i32, i32) {
    %c1_i32 = arith.constant 1 : i32
    %0 = arith.muli %arg1, %c1_i32 : i32
    %c0_i32 = arith.constant 0 : i32
    %1 = arith.addi %0, %c0_i32 : i32
    %c0_i32_0 = arith.constant 0 : i32
    %c0_i32_1 = arith.constant 0 : i32
    %c0_i32_2 = arith.constant 0 : i32
    return %arg0, %1, %c0_i32_0, %c0_i32_1 : i32, i32, i32, i32
  }
  func.func @transform_3(%arg0: i32, %arg1: i32) -> (i32, i32, i32, i32) {
    %c1_i32 = arith.constant 1 : i32
    %0 = arith.muli %arg1, %c1_i32 : i32
    %c0_i32 = arith.constant 0 : i32
    %1 = arith.addi %0, %c0_i32 : i32
    %c0_i32_0 = arith.constant 0 : i32
    %c0_i32_1 = arith.constant 0 : i32
    %c0_i32_2 = arith.constant 0 : i32
    return %arg0, %1, %c0_i32_0, %c0_i32_1 : i32, i32, i32, i32
  }
  func.func @transform_4(%arg0: i32, %arg1: i32) -> (i32, i32, i32, i32) {
    %c1_i32 = arith.constant 1 : i32
    %0 = arith.muli %arg1, %c1_i32 : i32
    %c1_i32_0 = arith.constant 1 : i32
    %1 = arith.addi %0, %c1_i32_0 : i32
    %c0_i32 = arith.constant 0 : i32
    %c0_i32_1 = arith.constant 0 : i32
    %c0_i32_2 = arith.constant 0 : i32
    return %arg0, %1, %c0_i32, %c0_i32_1 : i32, i32, i32, i32
  }
  func.func @transform_5(%arg0: i32, %arg1: i32) -> (i32, i32, i32, i32) {
    %c1_i32 = arith.constant 1 : i32
    %0 = arith.muli %arg1, %c1_i32 : i32
    %c1_i32_0 = arith.constant 1 : i32
    %1 = arith.addi %0, %c1_i32_0 : i32
    %c0_i32 = arith.constant 0 : i32
    %c0_i32_1 = arith.constant 0 : i32
    %c0_i32_2 = arith.constant 0 : i32
    return %arg0, %1, %c0_i32, %c0_i32_1 : i32, i32, i32, i32
  }
  func.func @transform_6(%arg0: i32, %arg1: i32) -> (i32, i32, i32, i32) {
    %c1_i32 = arith.constant 1 : i32
    %0 = arith.muli %arg1, %c1_i32 : i32
    %c1_i32_0 = arith.constant 1 : i32
    %1 = arith.addi %0, %c1_i32_0 : i32
    %c0_i32 = arith.constant 0 : i32
    %c0_i32_1 = arith.constant 0 : i32
    %c0_i32_2 = arith.constant 0 : i32
    return %arg0, %1, %c0_i32, %c0_i32_1 : i32, i32, i32, i32
  }
  func.func @transform_7(%arg0: i32, %arg1: i32) -> (i32, i32, i32, i32) {
    %c1_i32 = arith.constant 1 : i32
    %0 = arith.muli %arg1, %c1_i32 : i32
    %c1_i32_0 = arith.constant 1 : i32
    %1 = arith.addi %0, %c1_i32_0 : i32
    %c0_i32 = arith.constant 0 : i32
    %c0_i32_1 = arith.constant 0 : i32
    %c0_i32_2 = arith.constant 0 : i32
    return %arg0, %1, %c0_i32, %c0_i32_1 : i32, i32, i32, i32
  }
  func.func @transform_8(%arg0: i32, %arg1: i32) -> (i32, i32, i32, i32) {
    %c1_i32 = arith.constant 1 : i32
    %0 = arith.muli %arg1, %c1_i32 : i32
    %c2_i32 = arith.constant 2 : i32
    %1 = arith.addi %0, %c2_i32 : i32
    %c0_i32 = arith.constant 0 : i32
    %c0_i32_0 = arith.constant 0 : i32
    %c0_i32_1 = arith.constant 0 : i32
    return %arg0, %1, %c0_i32, %c0_i32_0 : i32, i32, i32, i32
  }
  func.func @transform_9(%arg0: i32, %arg1: i32) -> (i32, i32, i32, i32) {
    %c1_i32 = arith.constant 1 : i32
    %0 = arith.muli %arg1, %c1_i32 : i32
    %c2_i32 = arith.constant 2 : i32
    %1 = arith.addi %0, %c2_i32 : i32
    %c0_i32 = arith.constant 0 : i32
    %c0_i32_0 = arith.constant 0 : i32
    %c0_i32_1 = arith.constant 0 : i32
    return %arg0, %1, %c0_i32, %c0_i32_0 : i32, i32, i32, i32
  }
  func.func @transform_10(%arg0: i32, %arg1: i32) -> (i32, i32, i32, i32) {
    %c1_i32 = arith.constant 1 : i32
    %0 = arith.muli %arg1, %c1_i32 : i32
    %c2_i32 = arith.constant 2 : i32
    %1 = arith.addi %0, %c2_i32 : i32
    %c0_i32 = arith.constant 0 : i32
    %c0_i32_0 = arith.constant 0 : i32
    %c0_i32_1 = arith.constant 0 : i32
    return %arg0, %1, %c0_i32, %c0_i32_0 : i32, i32, i32, i32
  }
  func.func @transform_11(%arg0: i32, %arg1: i32) -> (i32, i32, i32, i32) {
    %c1_i32 = arith.constant 1 : i32
    %0 = arith.muli %arg1, %c1_i32 : i32
    %c2_i32 = arith.constant 2 : i32
    %1 = arith.addi %0, %c2_i32 : i32
    %c0_i32 = arith.constant 0 : i32
    %c0_i32_0 = arith.constant 0 : i32
    %c0_i32_1 = arith.constant 0 : i32
    return %arg0, %1, %c0_i32, %c0_i32_0 : i32, i32, i32, i32
  }
  func.func @transform_12(%arg0: i32, %arg1: i32) -> (i32, i32) {
    %c0_i32 = arith.constant 0 : i32
    %c0_i32_0 = arith.constant 0 : i32
    %c0_i32_1 = arith.constant 0 : i32
    return %c0_i32, %c0_i32_0 : i32, i32
  }
  func.func @transform_13(%arg0: i32, %arg1: i32) -> (i32, i32) {
    %c0_i32 = arith.constant 0 : i32
    %c0_i32_0 = arith.constant 0 : i32
    %c0_i32_1 = arith.constant 0 : i32
    return %c0_i32, %c0_i32_0 : i32, i32
  }
  func.func @transform_14(%arg0: i32, %arg1: i32) -> (i32, i32, i32, i32) {
    %c0_i32 = arith.constant 0 : i32
    %c0_i32_0 = arith.constant 0 : i32
    %c0_i32_1 = arith.constant 0 : i32
    return %arg0, %arg1, %c0_i32, %c0_i32_0 : i32, i32, i32, i32
  }
}

</mosaic_0001>

<bundles_post_ra>
// kernel: tpu_custom_call.1
= control target key start
LH: loop header
LB: loop body
LE: loop exit
PB: predicated region body
PF: predicated region fallthrough
CT: control target
= control target key end

     0   :  { %s3123_s0 = inlined_call_operand.hbm [shape: bf16[2,10,4,90], index: 0, kind: input, shape index: {}]   ;;  %s3124_s1 = inlined_call_operand.hbm [shape: bf16[2,10,4,90], index: 1, kind: input, shape index: {}]   ;;  %s3125_s2 = inlined_call_operand.hbm [shape: bf16[2,10,4,90], index: 2, kind: input, shape index: {}]   ;;  %s3126_s3 = inlined_call_operand.hbm [shape: bf16[2,10,4,90], index: 3, kind: input, shape index: {}]   ;;  %s3127_s4 = inlined_call_operand.hbm [shape: bf16[2,10,4,90], index: 4, kind: input, shape index: {}]   ;;  %s3128_s5 = inlined_call_operand.hbm [shape: bf16[2,10,4,90], index: 5, kind: input, shape index: {}]   ;;  %s3129_s6 = inlined_call_operand.hbm [shape: bf16[2,10,4,90], index: 6, kind: input, shape index: {}]   ;;  %s3130_s7 = inlined_call_operand.hbm [shape: bf16[2,10,4,90], index: 7, kind: input, shape index: {}]   ;;  %s3131_s8 = inlined_call_operand.hbm [shape: bf16[2,10,4,90], index: 8, kind: input, shape index: {}]   ;;  %s3132_s9 = inlined_call_operand.hbm [shape: bf16[2,10,4,90], index: 9, kind: input, shape index: {}]   ;;  %s3133_s10 = inlined_call_operand.hbm [shape: bf16[2,10,4,90], index: 10, kind: input, shape index: {}]   ;;  %s3134_s11 = inlined_call_operand.hbm [shape: bf16[2,10,4,90], index: 11, kind: input, shape index: {}]   ;;  %s3135_s12 = inlined_call_operand.vmem [shape: bf16[32,108], index: 12, kind: input, shape index: {}]   ;;  %s3136_s13 = inlined_call_operand.vmem [shape: f32[32,1], index: 13, kind: input, shape index: {}]   ;;  %s3137_s14 = inlined_call_operand.hbm [shape: bf16[2,8,32,72], index: 14, kind: output, shape index: {}]  }
   0x1   :  { %3162 = sst [smem:[#allocation49_spill]] %s3123_s0 }
   0x2   :  { %3163 = sst [smem:[#allocation50_spill]] %s3124_s1 }
   0x3   :  { %3164 = sst [smem:[#allocation51_spill]] %s3125_s2 }
   0x4   :  { %3165 = sst [smem:[#allocation52_spill]] %s3126_s3 }
   0x5   :  { %3166 = sst [smem:[#allocation53_spill]] %s3127_s4 }
   0x6   :  { %3167 = sst [smem:[#allocation54_spill]] %s3128_s5 }
   0x7   :  { %3168 = sst [smem:[#allocation55_spill]] %s3129_s6 }
   0x8   :  { %3169 = sst [smem:[#allocation56_spill]] %s3130_s7 }
   0x9   :  { %3170 = sst [smem:[#allocation57_spill]] %s3131_s8 }
   0xa   :  { %3171 = sst [smem:[#allocation58_spill]] %s3132_s9 }
   0xb   :  { %3172 = sst [smem:[#allocation59_spill]] %s3133_s10 }
   0xc   :  { %3173 = sst [smem:[#allocation60_spill]] %s3134_s11 }
   0xd   :  { %3174 = sst [smem:[#allocation61_spill]] %s3135_s12 }
   0xe   :  { %3175 = sst [smem:[#allocation62_spill]] %s3136_s13 }
   0xf   :  { %3176 = sst [smem:[#allocation63_spill]] %s3137_s14 }
  0x10   :  { %19 = vsyncpa [#allocation4], 0 }
  0x11   :  { %21 = vsyncpa [#allocation4 + $0x1], 0 }
  0x12   :  { %22 = vsyncpa [#allocation7], 0 }
  0x13   :  { %24 = vsyncpa [#allocation7 + $0x1], 0 }
  0x14   :  { %25 = vsyncpa [#allocation10], 0 }
  0x15   :  { %27 = vsyncpa [#allocation10 + $0x1], 0 }
  0x16   :  { %28 = vsyncpa [#allocation13], 0 }
  0x17   :  { %30 = vsyncpa [#allocation13 + $0x1], 0 }
  0x18   :  { %31 = vsyncpa [#allocation16], 0 }
  0x19   :  { %33 = vsyncpa [#allocation16 + $0x1], 0 }
  0x1a   :  { %34 = vsyncpa [#allocation19], 0 }
  0x1b   :  { %36 = vsyncpa [#allocation19 + $0x1], 0 }
  0x1c   :  { %37 = vsyncpa [#allocation22], 0 }
  0x1d   :  { %39 = vsyncpa [#allocation22 + $0x1], 0 }
  0x1e   :  { %40 = vsyncpa [#allocation5], 0 }
  0x1f   :  { %42 = vsyncpa [#allocation5 + $0x1], 0  ;;  %s2558_s29 = smov 0   ;;  %s2560_s30 = smov 0  }
  0x20   :  { %s2562_s15 = smov 0   ;;  %s2564_s16 = smov 0  }
  0x21   :  { %s2566_s17 = smov 0   ;;  %s2568_s18 = smov 0  }
  0x22   :  { %s2570_s19 = smov 0   ;;  %s2572_s20 = smov 0  }
  0x23   :  { %s2574_s21 = smov 0   ;;  %s2576_s22 = smov 0  }
  0x24   :  { %s2578_s23 = smov 0   ;;  %s2580_s24 = smov 0  }
  0x25   :  { %s2582_s25 = smov 0   ;;  %s2584_s26 = smov 0  }
  0x26 LB: > { %3177 = sst [smem:[#allocation34_spill]] %s2427_s30  ;;  %s2629_s27 = sadd.s32 4294967295, %s2475_s26   ;;  %s2475_s26 = sphi %s2584_s26, %s48_s26   ;;  %s2471_s25 = sphi %s2582_s25, %s3243_s25   ;;  %s2467_s24 = sphi %s2580_s24, %s3242_s24   ;;  %s2463_s23 = sphi %s2578_s23, %s3241_s23   ;;  %s2459_s22 = sphi %s2576_s22, %s3240_s22   ;;  %s2455_s21 = sphi %s2574_s21, %s3250_s21   ;;  %s2451_s20 = sphi %s2572_s20, %s3249_s20   ;;  %s2447_s19 = sphi %s2570_s19, %s3248_s19   ;;  %s2443_s18 = sphi %s2568_s18, %s3238_s18   ;;  %s2439_s17 = sphi %s2566_s17, %s3247_s17   ;;  %s2435_s16 = sphi %s2564_s16, %s3246_s16   ;;  %s2431_s15 = sphi %s2562_s15, %s3245_s15   ;;  %s2427_s30 = sphi %s2560_s30, %s3244_s30   ;;  %s2423_s29 = sphi %s2558_s29, %s3235_s29  }
  0x27   : > { %3178 = sst [smem:[#allocation35_spill]] %s2443_s18  ;;  %s57_s14 = sadd.s32 1, %s2467_s24 }
  0x28   : > { %3179 = sst [smem:[#allocation36_spill]] %s2447_s19  ;;  %s60_s12 = sadd.s32 1, %s2471_s25 }
  0x29   : > { %3180 = sst [smem:[#allocation37_spill]] %s2459_s22  ;;  %p58_p0 = scmp.ge.s32.totalorder %s57_s14, 8 }
  0x2a   : > { %3181 = sst [smem:[#allocation38_spill]] %s2463_s23  ;;  %s69_s23 = sadd.s32 1, %s2455_s21 }
  0x2b   : > { %3182 = sst [smem:[#allocation39_spill]] %s2467_s24  ;;  %p76_p1 = scmp.ne.s32.totalorder %s2455_s21, %s2451_s20 }
  0x2c   : > { %3183 = sst [smem:[#allocation40_spill]] %s2471_s25  ;;  %p77_p2 = scmp.eq.s32.totalorder %s2475_s26, 0 }
  0x2d   : > { %s2638_s22 = scalar_select %p58_p0, 0, %s57_s14  }
  0x2e   : > { %s3252_s12 = smov (!%p58_p0, %s60_s12), %s2471_s25  ;;  %p2648_p3 = por %p77_p2, %p76_p1 }
  0x2f   : > { %3184 = sst [smem:[#allocation41_spill]] %s2638_s22  ;;  %s65_s13 = ssub.s32 %s2467_s24, %s2638_s22 }
  0x30   : > { %p62_p4 = scmp.ge.s32.totalorder %s3252_s12, 2  ;;  %p3142_p5 = scmp.ne.s32.totalorder %s2451_s20, %s2447_s19 }
  0x31   : > { %p83_p6 = scmp.eq.s32.totalorder %s2629_s27, 0  ;;  %s177_s11 = sadd.s32 1, %s2638_s22 }
  0x32   : > { %s3254_s12 = smov (%p62_p4, %s3252_s12), 0  ;;  %s179_s8 = ssub.s32 %s57_s14, %s177_s11 }
  0x33   : > { %3186 = sst [smem:[#allocation42_spill]] %s3254_s12  ;;  %p2663_p7 = por %p83_p6, %p3142_p5 }
  0x34   : > { %s64_s6 = ssub.s32 %s2471_s25, %s3254_s12  ;;  %s183_s4 = sadd.s32 1, %s2443_s18 }
  0x35   : > { %s3187_s10 = scalar_select %p2663_p7, 1, 0 }
  0x36   : > { %s66_s2 = sor.u32 %s65_s13, %s64_s6  ;;  %s180_s0 = sor.u32 %s179_s8, %s64_s6 }
  0x37   : > { %p67_p8 = scmp.eq.s32.totalorder %s66_s2, 0  ;;  %p181_p9 = scmp.eq.s32.totalorder %s180_s0, 0 }
  0x38   : > { %p190_p10 = scmp.ne.s32.totalorder %s2443_s18, %s2439_s17  ;;  %p196_p11 = scmp.ne.s32.totalorder %s2439_s17, %s2435_s16 }
  0x39   : > { %s2675_s9 = scalar_select %p67_p8, %s2455_s21, %s69_s23  }
  0x3a   : > { %s2678_s11 = scalar_select %p181_p9, %s2443_s18, %s183_s4  }
  0x3b   : > { %3188 = sst [smem:[#allocation43_spill]] %s2675_s9  ;;  %p2682_p12 = por %p190_p10, %p77_p2 }
  0x3c   : > { %3189 = sst [smem:[#allocation44_spill]] %s2678_s11  ;;  %p2688_p13 = por %p196_p11, %p83_p6 }
  0x3d   : > { %s296_s2 = sadd.s32 2, %s2467_s24  ;;  %s297_s13 = sadd.s32 2, %s2638_s22 }
  0x3e   : > { %s3191_s0 = scalar_select %p2688_p13, 1, 0 }
  0x3f   : > { %s299_s14 = ssub.s32 %s296_s2, %s297_s13  ;;  %s303_s16 = sadd.s32 1, %s2431_s15 }
  0x40   : > { %s300_s23 = sor.u32 %s299_s14, %s64_s6  ;;  %p310_p0 = scmp.ne.s32.totalorder %s2431_s15, %s2427_s30 }
  0x41   : > { %p301_p4 = scmp.eq.s32.totalorder %s300_s23, 0  ;;  %p316_p8 = scmp.ne.s32.totalorder %s2427_s30, %s2423_s29 }
  0x42   : > { %p2701_p9 = por %p310_p0, %p77_p2  ;;  %p474_p10 = scmp.eq.s32.totalorder %s2629_s27, 15 }
  0x43   : > { %s2707_s12 = scalar_select %p301_p4, %s2431_s15, %s303_s16  }
  0x44   : > { %p2711_p11 = por %p316_p8, %p83_p6  ;;  %p2718_p5 = por %p474_p10, %p76_p1 }
  0x45   : > { %3193 = sst [smem:[#allocation45_spill]] %s2707_s12  ;;  %s3198_s6 = sadd.s32 4294967294, %s2475_s26  }
  0x46   : > { %s3194_s9 = scalar_select %p2711_p11, 1, 0 }
  0x47   : > { %s3196_s2 = scalar_select %p2718_p5, 1, 0 }
  0x48   : > { %3195 = sst [smem:[#allocation46_spill]] %s3194_s9  ;;  %p480_p13 = scmp.eq.s32.totalorder %s3198_s6, 15 }
  0x49   : > { %3197 = sst [smem:[#allocation47_spill]] %s3196_s2  ;;  %p3199_p7 = scmp.ne.s32.totalorder %s2451_s20, %s2447_s19 }
  0x4a   : > { %p1706_p0 = scmp.ge.s32.totalorder %s2475_s26, 16 }
  0x4b   : > { %p2727_p2 = por %p480_p13, %p3199_p7  ;;  %s3147_s13 = sand.u32 (!%p1706_p0), 1, %s2455_s21  }
  0x4c   : > { %502 = sbr.rel (%p1706_p0) target bundleno = 143 (0x8f), region = 24  ;;  %s2736_s16 = sshll.u32 (!%p1706_p0), %s3147_s13, 1 }
  0x4d   : > { %s3200_s29 = scalar_select %p2727_p2, 1, 0 }
  0x4e   : > { %s1805_s14 = smul.u32 (!%p1706_p0), 10, %s2471_s25  ;;  %s2739_s23 = sand.u32 (!%p1706_p0), 1, %s2475_s26  }
  0x4f   : > { %3201 = sst [smem:[#allocation48_spill]] %s3200_s29  ;;  %s531_s13 = scalar_lea.vmem (!%p1706_p0), [#allocation6], %s2736_s16 }
  0x50   : > { %s514_s6 = sadd.s32 (!%p1706_p0), %s2467_s24, %s1805_s14  ;;  %s3202_s1 = sld [smem:[#allocation50_spill]] (!%p1706_p0) }
  0x51   : > { %s2742_s22 = sshll.u32 %s514_s6, 1  ;;  %s541_s29 = sshll.u32 %s531_s13, 4  ;;  %s542_s29 = int_to_ptr.vmem [resolvable:$true] %s541_s29 }
  0x52   : > { %s3155_s2 = scalar_lea.sflag [#allocation7], %s2739_s23  ;;  %s3203_s3 = sld [smem:[#allocation52_spill]] }
  0x53   : > { %s573_s11 = scalar_lea.vmem [#allocation9], %s2736_s16  ;;  %s592_s13 = sand.u32 1, %s2443_s18  }
  0x54   : > { %s2765_s9 = sshll.u32 %s592_s13, 1  ;;  %s3204_s5 = sld [smem:[#allocation54_spill]] }
  0x55   : > { %s3205_s7 = sld [smem:[#allocation56_spill]] }
  0x56   : > { %s537_s25 = scalar_lea.hbm %s3202_s1, %s2742_s22  ;;  %s583_s1 = sshll.u32 %s573_s11, 4  ;;  %s584_s1 = int_to_ptr.vmem [resolvable:$true] %s583_s1 }
  0x57   : > { %s539_s19 = sshll.u32 %s537_s25, 4  ;;  %s3156_s25 = scalar_lea.sflag [#allocation10], %s2739_s23  ;;  %s540_s19 = int_to_ptr.hbm [resolvable:$true] %s539_s19 }
  0x58   : > { %1810 = dma.hbm_to_vmem [thread:$0]  (%p2648_p3), %s540_s19, 32, %s542_s29, %s3155_s2  }
  0x59   : > { %s579_s24 = scalar_lea.hbm %s3203_s3, %s2742_s22  ;;  %s616_s11 = scalar_lea.vmem [#allocation12], %s2765_s9 }
  0x5a   : > { %s581_s12 = sshll.u32 %s579_s24, 4  ;;  %s1433_s24 = scalar_lea.hbm %s3204_s5, %s2742_s22  ;;  %s582_s12 = int_to_ptr.hbm [resolvable:$true] %s581_s12 }
  0x5b   : > { %1812 = dma.hbm_to_vmem [thread:$0]  (%p2648_p3), %s582_s12, 32, %s584_s1, %s3156_s25  }
  0x5c   : > { %s1434_s14 = scalar_lea.hbm %s1433_s24, 2  ;;  %s627_s2 = sshll.u32 %s616_s11, 4  ;;  %s628_s2 = int_to_ptr.vmem [resolvable:$true] %s627_s2 }
  0x5d   : > { %s625_s6 = sshll.u32 %s1434_s14, 4  ;;  %s3157_s1 = scalar_lea.sflag [#allocation13], %s2739_s23  ;;  %s626_s6 = int_to_ptr.hbm [resolvable:$true] %s625_s6 }
  0x5e   : > { %1814 = dma.hbm_to_vmem [thread:$0]  (%p2682_p12), %s626_s6, 32, %s628_s2, %s3157_s1  }
  0x5f   : > { %s1449_s19 = scalar_lea.hbm %s3205_s7, %s2742_s22  ;;  %s660_s29 = scalar_lea.vmem [#allocation15], %s2765_s9 }
  0x60   : > { %s671_s24 = sshll.u32 %s660_s29, 4  ;;  %s1450_s14 = scalar_lea.hbm %s1449_s19, 2  ;;  %s672_s24 = int_to_ptr.vmem [resolvable:$true] %s671_s24 }
  0x61   : > { %s669_s11 = sshll.u32 %s1450_s14, 4  ;;  %s3158_s25 = sand.u32 1, %s2431_s15   ;;  %s670_s11 = int_to_ptr.hbm [resolvable:$true] %s669_s11 }
  0x62   : > { %s2785_s3 = sshll.u32 %s3158_s25, 1  ;;  %s3159_s2 = scalar_lea.sflag [#allocation16], %s2739_s23 }
  0x63   : > { %1816 = dma.hbm_to_vmem [thread:$0]  (%p2682_p12), %s670_s11, 32, %s672_s24, %s3159_s2  }
  0x64   : > { %s3206_s13 = sld [smem:[#allocation58_spill]]  ;;  %s704_s29 = scalar_lea.vmem [#allocation18], %s2785_s3 }
  0x65   : > { %s715_s14 = sshll.u32 %s704_s29, 4  ;;  %s701_s25 = scalar_lea.sflag [#allocation19], %s2739_s23  ;;  %s716_s14 = int_to_ptr.vmem [resolvable:$true] %s715_s14 }
  0x66   : > { %s3207_s6 = sld [smem:[#allocation49_spill]]  ;;  %s594_s7 = scalar_lea.vmem [#allocation11], %s2765_s9 }
  0x67   : > { %s3209_s30 = sld [smem:[#allocation51_spill]]  ;;  %s605_s18 = sshll.u32 %s594_s7, 4  ;;  %s606_s18 = int_to_ptr.vmem [resolvable:$true] %s605_s18 }
  0x68   : > { %s3215_s7 = sld [smem:[#allocation57_spill]] }
  0x6a   : > { %s1465_s19 = scalar_lea.hbm %s3206_s13, %s2742_s22  ;;  %s510_s13 = scalar_lea.vmem [#allocation3], %s2736_s16 }
  0x6b   : > { %s1466_s1 = scalar_lea.hbm %s1465_s19, 4  ;;  %s520_s2 = sshll.u32 %s510_s13, 4  ;;  %s521_s2 = int_to_ptr.vmem [resolvable:$true] %s520_s2 }
  0x6c   : > { %s713_s5 = sshll.u32 %s1466_s1, 4  ;;  %s516_s12 = scalar_lea.hbm %s3207_s6, %s2742_s22  ;;  %s714_s5 = int_to_ptr.hbm [resolvable:$true] %s713_s5 }
  0x6d   : > { %1818 = dma.hbm_to_vmem [thread:$0]  (%p2701_p9), %s714_s5, 32, %s716_s14, %s701_s25  }
  0x6e   : > { %s518_s29 = sshll.u32 %s516_s12, 4  ;;  %s3208_s19 = sand.u32 1, %s2455_s21   ;;  %s519_s29 = int_to_ptr.hbm [resolvable:$true] %s518_s29 }
  0x6f   : > { %s507_s1 = scalar_lea.sflag [#allocation4], %s3208_s19  ;;  %s558_s5 = scalar_lea.hbm %s3209_s30, %s2742_s22 }
  0x70   : > { %1809 = dma.hbm_to_vmem [thread:$0]  (%p2648_p3), %s519_s29, 32, %s521_s2, %s507_s1  }
  0x71   : > { %s552_s14 = scalar_lea.vmem [#allocation8], %s2736_s16  ;;  %s560_s11 = sshll.u32 %s558_s5, 4  ;;  %s561_s11 = int_to_ptr.hbm [resolvable:$true] %s560_s11 }
  0x72   : > { %s562_s24 = sshll.u32 %s552_s14, 4  ;;  %s3210_s6 = scalar_lea.sflag [#allocation7], %s2739_s23  ;;  %s563_s24 = int_to_ptr.vmem [resolvable:$true] %s562_s24 }
  0x73   : > { %1811 = dma.hbm_to_vmem [thread:$0]  (%p2648_p3), %s561_s11, 32, %s563_s24, %s3210_s6  }
  0x74   : > { %s3211_s19 = sld [smem:[#allocation53_spill]]  ;;  %s3213_s14 = scalar_lea.sflag [#allocation10], %s2739_s23 }
  0x75   : > { %s3212_s5 = sld [smem:[#allocation55_spill]]  ;;  %s638_s11 = scalar_lea.vmem [#allocation14], %s2765_s9 }
  0x76   : > { %s649_s6 = sshll.u32 %s638_s11, 4  ;;  %s3214_s13 = scalar_lea.sflag [#allocation13], %s2739_s23  ;;  %s650_s6 = int_to_ptr.vmem [resolvable:$true] %s649_s6 }
  0x77   : > { %s726_s11 = scalar_lea.vmem [#allocation20], %s2785_s3 }
  0x7a   : > { %s1425_s2 = scalar_lea.hbm %s3211_s19, %s2742_s22 }
  0x7b   : > { %s1426_s30 = scalar_lea.hbm %s1425_s2, 2  ;;  %s1441_s28 = scalar_lea.hbm %s3212_s5, %s2742_s22 }
  0x7c   : > { %s603_s16 = sshll.u32 %s1426_s30, 4  ;;  %s1442_s24 = scalar_lea.hbm %s1441_s28, 2  ;;  %s604_s16 = int_to_ptr.hbm [resolvable:$true] %s603_s16 }
  0x7d   : > { %1813 = dma.hbm_to_vmem [thread:$0]  (%p2682_p12), %s604_s16, 32, %s606_s18, %s3213_s14  }
  0x7e   : > { %s647_s12 = sshll.u32 %s1442_s24, 4  ;;  %s1457_s30 = scalar_lea.hbm %s3215_s7, %s2742_s22  ;;  %s648_s12 = int_to_ptr.hbm [resolvable:$true] %s647_s12 }
  0x7f   : > { %1815 = dma.hbm_to_vmem [thread:$0]  (%p2682_p12), %s648_s12, 32, %s650_s6, %s3214_s13  }
  0x80   : > { %s682_s18 = scalar_lea.vmem [#allocation17], %s2785_s3  ;;  %s1458_s29 = scalar_lea.hbm %s1457_s30, 4 }
  0x81   : > { %s693_s16 = sshll.u32 %s682_s18, 4  ;;  %s691_s9 = sshll.u32 %s1458_s29, 4  ;;  %s694_s16 = int_to_ptr.vmem [resolvable:$true] %s693_s16  ;;  %s692_s9 = int_to_ptr.hbm [resolvable:$true] %s691_s9 }
  0x82   : > { %s3216_s28 = sld [smem:[#allocation59_spill]]  ;;  %s3217_s14 = scalar_lea.sflag [#allocation16], %s2739_s23 }
  0x83   : > { %1817 = dma.hbm_to_vmem [thread:$0]  (%p2701_p9), %s692_s9, 32, %s694_s16, %s3217_s14  }
  0x84   : > { %s737_s6 = sshll.u32 %s726_s11, 4  ;;  %s3218_s2 = sld [smem:[#allocation60_spill]]  ;;  %s738_s6 = int_to_ptr.vmem [resolvable:$true] %s737_s6 }
  0x85   : > { %s748_s18 = scalar_lea.vmem [#allocation21], %s2785_s3  ;;  %s3219_s16 = sand.u32 1, %s2431_s15  }
  0x86   : > { %s759_s29 = sshll.u32 %s748_s18, 4  ;;  %s745_s9 = scalar_lea.sflag [#allocation22], %s3219_s16  ;;  %s760_s29 = int_to_ptr.vmem [resolvable:$true] %s759_s29 }
  0x88   : > { %s1473_s8 = scalar_lea.hbm %s3216_s28, %s2742_s22 }
  0x89   : > { %s1474_s24 = scalar_lea.hbm %s1473_s8, 4 }
  0x8a   : > { %s735_s12 = sshll.u32 %s1474_s24, 4  ;;  %s1481_s7 = scalar_lea.hbm %s3218_s2, %s2742_s22  ;;  %s736_s12 = int_to_ptr.hbm [resolvable:$true] %s735_s12 }
  0x8b   : > { %1819 = dma.hbm_to_vmem [thread:$0]  (%p2701_p9), %s736_s12, 32, %s738_s6, %s701_s25  }
  0x8c   : > { %s1482_s30 = scalar_lea.hbm %s1481_s7, 4 }
  0x8d   : > { %s757_s1 = sshll.u32 %s1482_s30, 4  ;;  %s758_s1 = int_to_ptr.hbm [resolvable:$true] %s757_s1 }
  0x8e   : > { %1820 = dma.hbm_to_vmem [thread:$0]  (%p2701_p9), %s758_s1, 32, %s760_s29, %s745_s9  }
  0x8f PF: > { %p1731_p1 = scmp.ge.s32.totalorder %s2475_s26, 1  ;;  %p764_p3 = scmp.lt.s32.totalorder %s2475_s26, 17 }
  0x91   : > { %p765_p6 = pnand %p1731_p1, %p764_p3 }
  0x92   : > { %s2868_s22 = sand.u32 (!%p765_p6), 1, %s2451_s20   ;;  %p3220_p7 = scmp.ne.s32.totalorder (!%p765_p6), %s3187_s10, 0 }
  0x93   : > { %768 = sbr.rel (%p765_p6) target bundleno = 651 (0x28b), region = 76  ;;  %s2871_s3 = sshll.u32 (!%p765_p6), %s2868_s22, 1 }
  0x94   : > { %s771_s23 = scalar_lea.sflag (!%p765_p6), [#allocation4], %s2868_s22  ;;  %s2875_s25 = scalar_lea.vmem (!%p765_p6), [#allocation3], %s2871_s3 }
  0x98   : > { %2382 = dma.done.wait (%p3220_p7), %s771_s23, 32  }
  0x99   : > { %2384 = vsyncadd (%p3220_p7), %s771_s23, 4294967264  ;;  %s2882_s4 = sand.u32 1, %s2629_s27   ;;  %s784_s28 = scalar_lea.vmem [#allocation6], %s2871_s3 }
  0x9a   : > { %s781_s5 = scalar_lea.sflag [#allocation7], %s2882_s4 }
  0x9b   : > { %2386 = dma.done.wait (%p3220_p7), %s781_s5, 64  }
  0x9c   : > { %2388 = vsyncadd (%p3220_p7), %s781_s5, 4294967232  ;;  %s794_s8 = scalar_lea.vmem [#allocation8], %s2871_s3  ;;  %s801_s14 = scalar_lea.sflag [#allocation10], %s2882_s4 }
  0x9d   : > { %s804_s24 = scalar_lea.vmem [#allocation9], %s2871_s3 }
  0x9e   : > { %2390 = dma.done.wait (%p3220_p7), %s801_s14, 32  }
  0x9f   : > { %2392 = vsyncadd (%p3220_p7), %s801_s14, 4294967264  ;;  %s812_s27 = sand.u32 1, %s2439_s17   ;;  %p3221_p12 = scmp.ne.s32.totalorder %s3191_s0, 0 }
  0xa0   : > { %s2898_s11 = sshll.u32 %s812_s27, 1 }
  0xa1   : > { %s2901_s6 = scalar_lea.vmem [#allocation11], %s2898_s11 }
  0xa2   : > { %2394 = dma.done.wait (%p3221_p12), %s801_s14, 32  }
  0xa3   : > { %2396 = vsyncadd (%p3221_p12), %s801_s14, 4294967264  ;;  %s821_s12 = scalar_lea.sflag [#allocation13], %s2882_s4  ;;  %s824_s13 = scalar_lea.vmem [#allocation12], %s2898_s11 }
  0xa4   : > { %2398 = dma.done.wait (%p3221_p12), %s821_s12, 64  }
  0xa5   : > { %2400 = vsyncadd (%p3221_p12), %s821_s12, 4294967232  ;;  %s834_s10 = scalar_lea.vmem [#allocation14], %s2898_s11  ;;  %s841_s19 = scalar_lea.sflag [#allocation16], %s2882_s4 }
  0xa6   : > { %s844_s2 = scalar_lea.vmem [#allocation15], %s2898_s11 }
  0xa7   : > { %2402 = dma.done.wait (%p3221_p12), %s841_s19, 32  }
  0xa8   : > { %2404 = vsyncadd (%p3221_p12), %s841_s19, 4294967264  ;;  %s3222_s7 = sld [smem:[#allocation34_spill]] }
  0xae   : > { %s852_s18 = sand.u32 1, %s3222_s7  }
  0xaf   : > { %s2921_s29 = sshll.u32 %s852_s18, 1 }
  0xb0   : > { %s2924_s1 = scalar_lea.vmem [#allocation17], %s2921_s29 }
  0xb1   : > { %2406 = dma.done.wait (%p2711_p11), %s841_s19, 32  }
  0xb2   : > { %2408 = vsyncadd (%p2711_p11), %s841_s19, 4294967264  ;;  %s861_s16 = scalar_lea.sflag [#allocation19], %s2882_s4  ;;  %s864_s9 = scalar_lea.vmem [#allocation18], %s2921_s29 }
  0xb3   : > { %2410 = dma.done.wait (%p2711_p11), %s861_s16, 64  }
  0xb4   : > { %2412 = vsyncadd (%p2711_p11), %s861_s16, 4294967232  ;;  %s874_s0 = scalar_lea.vmem [#allocation20], %s2921_s29  ;;  %s881_s23 = scalar_lea.sflag [#allocation22], %s852_s18 }
  0xb5   : > { %s884_s5 = scalar_lea.vmem [#allocation21], %s2921_s29 }
  0xb6   : > { %2414 = dma.done.wait (%p2711_p11), %s881_s23, 32  }
  0xb7   : > { %2416 = vsyncadd (%p2711_p11), %s881_s23, 4294967264  ;;  %v997_v0 = vld [vmem:[%s784_s28] sm:$0x3]  ;;  %v1005_v1 = vld [vmem:[%s2875_s25] sm:$0x3]  ;;  %s2477_s4 = smov 119  }
  0xb8   : > { %1000 = vst [vmem:[#allocation1 + $0x1] ss:$2 sm:$0xff] %v997_v0  ;;  %v1014_v3 = vld [vmem:[%s794_s8] sm:$0x3]  ;;  %v1033_v7 = vld [vmem:[%s2875_s25] sm:$0x3] }
  0xb9   : > { %v1023_v5 = vld [vmem:[%s794_s8] sm:$0x3]  ;;  %v1042_v9 = vld [vmem:[%s784_s28] sm:$0x3]  ;;  %v1052_v11 = vld [vmem:[%s2875_s25] sm:$0x3] }
  0xba   : > { %v1061_v13 = vld [vmem:[%s2901_s6] sm:$0x3]  ;;  %v1082_v17 = vld [vmem:[%s844_s2] sm:$0x3]  ;;  %v1089_v19 = vld [vmem:[%s834_s10] sm:$0x3] }
  0xbb   : > { %v1070_v15 = vld [vmem:[%s2901_s6] sm:$0x3]  ;;  %v1108_v23 = vld [vmem:[%s824_s13] sm:$0x3]  ;;  %v1129_v27 = vld [vmem:[%s864_s9] sm:$0x3] }
  0xbc   : > { %v1098_v21 = vld [vmem:[%s2901_s6] sm:$0x3]  ;;  %v1136_v29 = vld [vmem:[%s2924_s1] sm:$0x3]  ;;  %v1145_v31 = vld [vmem:[%s874_s0] sm:$0x3] }
  0xbd   : > { %v1117_v25 = vld [vmem:[%s2901_s6] sm:$0x3]  ;;  %s2478_s28 = smov 127   ;;  %v1154_v33 = vld [vmem:[%s874_s0] sm:$0x3]  ;;  %s2479_s8 = smov 118  }
  0xbe   : > { %v1164_v35 = vld [vmem:[%s2924_s1] sm:$0x3]  ;;  %v1173_v37 = vld [vmem:[%s864_s9] sm:$0x3]  ;;  %vm995_vm0 = vcmask 582656   ;;  %vm1003_vm1 = vcmask 584706  }
  0xbf   : > { %v2945_v2 = vld.sshfl [vmem:[#allocation1] sm:$0xff pattern:$0x75643120]  ;;  %v1152_v45 = vld [vmem:[%s884_s5] sm:$0x3]  ;;  %vm1292_vm2 = vcmask 1045504  }
  0xc0   : > { %1007 = vst [vmem:[#allocation1] ss:$2 sm:$0xff] %v1005_v1  ;;  %v1183_v39 = vld [vmem:[%s2924_s1] sm:$0x3]  ;;  %v1080_v48 = vld [vmem:[%s834_s10] sm:$0x3] }
  0xc1   : > { %1004 = vst.msk [vmem:[#allocation2] sm:$0xc] %vm1003_vm1, %v2945_v2  ;;  %v1127_v46 = vld [vmem:[%s2924_s1] sm:$0x3]  ;;  %v1068_v51 = vld [vmem:[%s824_s13] sm:$0x3] }
  0xc2   : > { %1153 = vst.msk [vmem:[#allocation2 + $0x2c] sm:$0x3] %vm995_vm0, %v1152_v45  ;;  %v1021_v54 = vld [vmem:[%s804_s24] sm:$0x3]  ;;  %v994_v55 = vld [vmem:[%s2875_s25] sm:$0x3] }
  0xc3   : > { %1128 = vst.msk [vmem:[#allocation2 + $0x24] sm:$0x3] %vm995_vm0, %v1127_v46  ;;  %s3224_s24 = sld [smem:[#allocation62_spill]]  ;;  %v2480_v0 = vmov 0   ;;  %vm1285_vm3 = vcmask 883712   ;;  %s1744_s23 = sshll.u32 %s2868_s22, 4 }
  0xc4   : > { %1081 = vst.msk [vmem:[#allocation2 + $0x18] sm:$0x3] %vm995_vm0, %v1080_v48  ;;  %1959 = vset.pattern.permute.xlu1 %v2480_v0  ;;  %1958 = vset.pattern.permute.xlu0 %v2480_v0  ;;  %s3226_s19 = sld [smem:[#allocation37_spill]]  ;;  %vm1323_vm4 = vcmask 584704   ;;  %s1329_s12 = scalar_lea.sflag [#allocation5], %s2868_s22 }
  0xc5   : > { %1069 = vst.msk [vmem:[#allocation2 + $0x14] sm:$0x3] %vm995_vm0, %v1068_v51  ;;  %1960 = vset.pattern.permute.xlu2 %v2480_v0  ;;  %s3227_s2 = sld [smem:[#allocation38_spill]] }
  0xc6   : > { %1022 = vst.msk [vmem:[#allocation2 + $0x8] sm:$0x3] %vm995_vm0, %v1021_v54  ;;  %s3228_s18 = sld [smem:[#allocation61_spill]] }
  0xc7   : > { %v2949_v4 = vld.sshfl [vmem:[#allocation1] sm:$0xff pattern:$0x75643120]  ;;  %996 = vst.msk [vmem:[#allocation2] sm:$0x3] %vm995_vm0, %v994_v55  ;;  %s3230_s14 = sld [smem:[#allocation63_spill]] }
  0xc8   : > { %1017 = vst [vmem:[#allocation1 + $0x1] ss:$2 sm:$0xff] %v1014_v3 }
  0xc9   : > { %s3225_s27 = smov %s3224_s24  ;;  %v1211_v62 = vld [vmem:[%s3224_s24 + $0x8] sm:$0xff] }
  0xca   : > { %v1210_v1 = vld [vmem:[%s3225_s27] sm:$0xff]  ;;  %v1212_v2 = vld [vmem:[%s3225_s27 + $0x10] sm:$0xff]  ;;  %s1784_s9 = sshll.u32 %s3226_s19, 2 }
  0xcb   : > { %s1785_s0 = sshll.u32 %s3227_s2, 5 }
  0xcc   : > { %s3229_s1 = smov %s3228_s18  ;;  %s1340_s5 = sadd.s32 %s1785_s0, %s1784_s9 }
  0xcd   : > { %s2317_s7 = scalar_lea.hbm %s3230_s14, 256 }
  0xcf   : > { %v2953_v6 = vld.sshfl [vmem:[#allocation1] sm:$0xff pattern:$0x75643120] }
  0xd0   : > { %1026 = vst [vmem:[#allocation1 + $0x1] ss:$2 sm:$0xff] %v1023_v5 }
  0xd1   : > { %1020 = vst.msk [vmem:[#allocation2 + $0x4] sm:$0xc] %vm1003_vm1, %v2953_v6 }
  0xd7   : > { %v1027_v8 = vld.sshfl [vmem:[#allocation1] sm:$0xff pattern:$0x75643120] }
  0xd8   : > { %1035 = vst [vmem:[#allocation1] ss:$2 sm:$0xff] %v1033_v7  ;;  %v1213_v7 = vld [vmem:[%s3225_s27 + $0x18] sm:$0xff] }
  0xdf   : > { %v2958_v10 = vld.sshfl [vmem:[#allocation1] sm:$0xff pattern:$0x75643120] }
  0xe0   : > { %1045 = vst [vmem:[#allocation1 + $0x1] ss:$2 sm:$0xff] %v1042_v9 }
  0xe7   : > { %v1046_v12 = vld.sshfl [vmem:[#allocation1] sm:$0xff pattern:$0x75643120] }
  0xe8   : > { %1054 = vst [vmem:[#allocation1] ss:$2 sm:$0xff] %v1052_v11 }
  0xef   : > { %v1055_v14 = vld.sshfl [vmem:[#allocation1] sm:$0xff pattern:$0x75643120] }
  0xf0   : > { %1064 = vst [vmem:[#allocation1 + $0x1] ss:$2 sm:$0xff] %v1061_v13 }
  0xf7   : > { %v2963_v16 = vld.sshfl [vmem:[#allocation1] sm:$0xff pattern:$0x75643120] }
  0xf8   : > { %1073 = vst [vmem:[#allocation1 + $0x1] ss:$2 sm:$0xff] %v1070_v15  ;;  %v1790_v15 = vld [vmem:[%s3229_s1 + $0x8] sm:$0xff] }
  0xf9   : > { %1067 = vst.msk [vmem:[#allocation2 + $0x10] sm:$0xc] %vm1003_vm1, %v2963_v16 }
  0xff   : > { %v1074_v18 = vld.sshfl [vmem:[#allocation1] sm:$0xff pattern:$0x75643120] }
 0x100   : > { %1085 = vst [vmem:[#allocation1 + $0x1] ss:$2 sm:$0xff] %v1082_v17 }
 0x107   : > { %v1086_v20 = vld.sshfl [vmem:[#allocation1] sm:$0xff pattern:$0x75643120] }
 0x108   : > { %1091 = vst [vmem:[#allocation1] ss:$2 sm:$0xff] %v1089_v19 }
 0x109   : > { %1088 = vst.msk [vmem:[#allocation2 + $0x18] sm:$0xc] %vm1003_vm1, %v1086_v20 }
 0x10f   : > { %v1092_v22 = vld.sshfl [vmem:[#allocation1] sm:$0xff pattern:$0x75643120] }
 0x110   : > { %1101 = vst [vmem:[#allocation1 + $0x1] ss:$2 sm:$0xff] %v1098_v21 }
 0x117   : > { %v1102_v24 = vld.sshfl [vmem:[#allocation1] sm:$0xff pattern:$0x75643120] }
 0x118   : > { %1110 = vst [vmem:[#allocation1] ss:$2 sm:$0xff] %v1108_v23 }
 0x11f   : > { %v1111_v26 = vld.sshfl [vmem:[#allocation1] sm:$0xff pattern:$0x75643120] }
 0x120   : > { %1120 = vst [vmem:[#allocation1 + $0x1] ss:$2 sm:$0xff] %v1117_v25  ;;  %1113 = vrot.lane.b32.xlu2 %v1111_v26, %s2477_s4 }
 0x127   : > { %v1121_v28 = vld.sshfl [vmem:[#allocation1] sm:$0xff pattern:$0x75643120] }
 0x128   : > { %1132 = vst [vmem:[#allocation1 + $0x1] ss:$2 sm:$0xff] %v1129_v27 }
 0x12f   : > { %v1133_v30 = vld.sshfl [vmem:[#allocation1] sm:$0xff pattern:$0x75643120] }
 0x130   : > { %1138 = vst [vmem:[#allocation1] ss:$2 sm:$0xff] %v1136_v29 }
 0x131   : > { %1135 = vst.msk [vmem:[#allocation2 + $0x24] sm:$0xc] %vm1003_vm1, %v1133_v30 }
 0x137   : > { %v1139_v32 = vld.sshfl [vmem:[#allocation1] sm:$0xff pattern:$0x75643120] }
 0x138   : > { %1148 = vst [vmem:[#allocation1 + $0x1] ss:$2 sm:$0xff] %v1145_v31  ;;  %1141 = vrot.lane.b32.xlu1 %v1139_v32, %s2478_s28 }
 0x13f   : > { %v1149_v34 = vld.sshfl [vmem:[#allocation1] sm:$0xff pattern:$0x75643120] }
 0x140   : > { %1157 = vst [vmem:[#allocation1 + $0x1] ss:$2 sm:$0xff] %v1154_v33 }
 0x141   : > { %1151 = vst.msk [vmem:[#allocation2 + $0x28] sm:$0xc] %vm1003_vm1, %v1149_v34 }
 0x147   : > { %v1158_v36 = vld.sshfl [vmem:[#allocation1] sm:$0xff pattern:$0x75643120] }
 0x148   : > { %1166 = vst [vmem:[#allocation1] ss:$2 sm:$0xff] %v1164_v35  ;;  %1160 = vrot.lane.b32.xlu2 %v1158_v36, %s2478_s28 }
 0x14f   : > { %v1167_v38 = vld.sshfl [vmem:[#allocation1] sm:$0xff pattern:$0x75643120] }
 0x150   : > { %1169 = vrot.lane.b32.xlu0 %v1167_v38, %s2477_s4  ;;  %1176 = vst [vmem:[#allocation1 + $0x1] ss:$2 sm:$0xff] %v1173_v37  ;;  %1104 = vrot.lane.b32.xlu2 %v1102_v24, %s2477_s4 }
 0x157   : > { %v1177_v40 = vld.sshfl [vmem:[#allocation1] sm:$0xff pattern:$0x75643120] }
 0x158   : > { %1179 = vrot.lane.b32.xlu0 %v1177_v40, %s2477_s4  ;;  %1185 = vst [vmem:[#allocation1] ss:$2 sm:$0xff] %v1183_v39  ;;  %1029 = vrot.lane.b32.xlu2 %v1027_v8, %s2478_s28 }
 0x15f   : > { %v1186_v41 = vld.sshfl [vmem:[#allocation1] sm:$0xff pattern:$0x75643120] }
 0x160   : > { %1123 = vrot.lane.b32.xlu0 %v1121_v28, %s2479_s8  ;;  %1188 = vrot.lane.b32.xlu1 %v1186_v41, %s2479_s8 }
 0x161   : > { %1010 = vrot.lane.b32.xlu2 %v2949_v4, %s2478_s28 }
 0x168   : > { %1094 = vrot.lane.b32.xlu1 %v1092_v22, %s2478_s28  ;;  %1057 = vrot.lane.b32.xlu0 %v1055_v14, %s2479_s8  ;;  %v1789_v14 = vld [vmem:[%s3228_s18] sm:$0xff] }
 0x169   : > { %1226 = vperm.xlu2 %1960, %v1212_v2  }
 0x170   : > { %1076 = vrot.lane.b32.xlu1 %v1074_v18, %s2478_s28  ;;  %1038 = vrot.lane.b32.xlu0 %v2958_v10, %s2477_s4  ;;  %s984_s28 = scalar_lea.vmem [#allocation23], %s1744_s23 }
 0x171   : > { %s1343_s25 = sshll.u32 %s984_s28, 4  ;;  %s1344_s25 = int_to_ptr.vmem [resolvable:$true] %s1343_s25 }
 0x178   : > { %1048 = vrot.lane.b32.xlu1 %v1046_v12, %s2477_s4  ;;  %1216 = vperm.xlu0 %1958, %v1210_v1   ;;  %s1786_s4 = sshll.u32 %s1340_s5, 2 }
 0x179   : > { %s1342_s24 = scalar_lea.hbm %s3230_s14, %s1786_s4 }
 0x17a   : > { %v1114_v42 = vpop.permute.xlu2 %1113  ;;  %s1345_s6 = sshll.u32 %s1342_s24, 4  ;;  %s1346_s6 = int_to_ptr.hbm [resolvable:$true] %s1345_s6 }
 0x17b   : > { %1116 = vst.msk [vmem:[#allocation2 + $0x20] sm:$0x3] %vm995_vm0, %v1114_v42  ;;  %s2311_s13 = sshra.s32 %s1346_s6, 4  ;;  %s2312_s13 = int_to_ptr.hbm [resolvable:$true] %s2311_s13 }
 0x17c   : > { %s2313_s10 = scalar_lea.hbm %s2312_s13, 16  ;;  %p2318_p9 = scmp.lt.s32.totalorder %s2312_s13, %s3230_s14 }
 0x17d   : > { %p2314_p13 = scmp.ne.s32.totalorder %s2312_s13, %s2313_s10  ;;  %p2319_p10 = scmp.lt.s32.totalorder %s2317_s7, %s2313_s10 }
 0x17f   : > { %p2315_p4 = pnand %p2314_p13, %p2718_p5  ;;  %p2320_p11 = por %p2319_p10, %p2318_p9 }
 0x180   : > { %1221 = vperm.xlu1 %1959, %v1211_v62  }
 0x181   : > { %p2316_p8 = pneg %p2315_p4 }
 0x183   : > { %p2321_p0 = pnand %p2320_p11, %p2316_p8 }
 0x188   : > { %1231 = vperm.xlu1 %1959, %v1213_v7  }
 0x1a2   : > { %v1161_v43 = vpop.permute.xlu2 %1160 }
 0x1a3   : > { %1163 = vst.msk [vmem:[#allocation2 + $0x2c] sm:$0xc] %vm1003_vm1, %v1161_v43 }
 0x1aa   : > { %v1142_v44 = vpop.permute.xlu1 %1141  ;;  %v1105_v47 = vpop.permute.xlu2 %1104 }
 0x1ab   : > { %1144 = vst.msk [vmem:[#allocation2 + $0x28] sm:$0x3] %vm995_vm0, %v1142_v44 }
 0x1ac   : > { %1107 = vst.msk [vmem:[#allocation2 + $0x1c] sm:$0xc] %vm1003_vm1, %v1105_v47 }
 0x1b2   : > { %v1030_v50 = vpop.permute.xlu2 %1029  ;;  %v1796_v4 = vld [vmem:[#allocation2 + $0x28] sm:$0xff] }
 0x1b3   : > { %1032 = vst.msk [vmem:[#allocation2 + $0x8] sm:$0xc] %vm1003_vm1, %v1030_v50 }
 0x1bb   : > { %v1011_v53 = vpop.permute.xlu2 %1010 }
 0x1bc   : > { %1013 = vst.msk [vmem:[#allocation2 + $0x4] sm:$0x3] %vm995_vm0, %v1011_v53 }
 0x1c2   : > { %v1170_v49 = vpop.permute.xlu0 %1169 }
 0x1c3   : > { %1172 = vst.msk [vmem:[#allocation2 + $0x30] sm:$0x3] %vm995_vm0, %v1170_v49  ;;  %v1791_v13 = vld [vmem:[#allocation2] sm:$0xff]  ;;  %v1227_v17 = vpop.permute.xlu2 %1226 }
 0x1ca   : > { %v1180_v52 = vpop.permute.xlu0 %1179 }
 0x1cb   : > { %1182 = vst.msk [vmem:[#allocation2 + $0x30] sm:$0xc] %vm1003_vm1, %v1180_v52 }
 0x1d2   : > { %v1124_v56 = vpop.permute.xlu0 %1123  ;;  %v1189_v57 = vpop.permute.xlu1 %1188  ;;  %v1779_v59 = vld [vmem:[#allocation2 + $0x30] sm:$0xf] }
 0x1d3   : > { %1126 = vst.msk [vmem:[#allocation2 + $0x20] sm:$0xc] %vm1003_vm1, %v1124_v56 }
 0x1d4   : > { %1191 = vst.msk [vmem:[#allocation2 + $0x34] sm:$0x3] %vm995_vm0, %v1189_v57 }
 0x1da   : > { %v1095_v58 = vpop.permute.xlu1 %1094  ;;  %v1058_v60 = vpop.permute.xlu0 %1057  ;;  %v1795_v8 = vld [vmem:[#allocation2 + $0x20] sm:$0xff] }
 0x1db   : > { %1097 = vst.msk [vmem:[#allocation2 + $0x1c] sm:$0x3] %vm995_vm0, %v1095_v58  ;;  %v1797_v61 = vld [vmem:[#allocation2 + $0x30] sm:$0x30] }
 0x1dc   : > { %v1780_v63 = vor.u32 %v1797_v61, %v1779_v59  ;;  %1060 = vst.msk [vmem:[#allocation2 + $0x10] sm:$0x3] %vm995_vm0, %v1058_v60 }
 0x1de   : > { %v1294_v3 = vsel %vm1292_vm2, %v1780_v63, 0 }
 0x1df   : > { %1297 = vmatpush.bf16.msra.mxu0 %v1294_v3  ;;  %1798 = vmatpush.bf16.msra.mxu1 %v1294_v3 }
 0x1e2   : > { %v1077_v5 = vpop.permute.xlu1 %1076  ;;  %v1039_v6 = vpop.permute.xlu0 %1038  ;;  %v1794_v9 = vld [vmem:[#allocation2 + $0x18] sm:$0xff] }
 0x1e3   : > { %1079 = vst.msk [vmem:[#allocation2 + $0x14] sm:$0xc] %vm1003_vm1, %v1077_v5  ;;  %1298 = vmatpush.bf16.msra.mxu0 %v1796_v4  ;;  %1799 = vmatpush.bf16.msra.mxu1 %v1796_v4 }
 0x1e4   : > { %1041 = vst.msk [vmem:[#allocation2 + $0xc] sm:$0x3] %vm995_vm0, %v1039_v6 }
 0x1e7   : > { %1299 = vmatpush.bf16.msra.mxu0 %v1795_v8  ;;  %1800 = vmatpush.bf16.msra.mxu1 %v1795_v8 }
 0x1ea   : > { %v1049_v10 = vpop.permute.xlu1 %1048  ;;  %v1793_v11 = vld [vmem:[#allocation2 + $0x10] sm:$0xff]  ;;  %v1217_v18 = vpop.permute.xlu0 %1216 }
 0x1eb   : > { %1051 = vst.msk [vmem:[#allocation2 + $0xc] sm:$0xc] %vm1003_vm1, %v1049_v10  ;;  %1300 = vmatpush.bf16.msra.mxu0 %v1794_v9  ;;  %1801 = vmatpush.bf16.msra.mxu1 %v1794_v9 }
 0x1ef   : > { %1301 = vmatpush.bf16.msra.mxu0 %v1793_v11  ;;  %1802 = vmatpush.bf16.msra.mxu1 %v1793_v11 }
 0x1f2   : > { %v1792_v12 = vld [vmem:[#allocation2 + $0x8] sm:$0xff]  ;;  %v1222_v16 = vpop.permute.xlu1 %1221 }
 0x1f3   : > { %1302 = vmatpush.bf16.msra.mxu0 %v1792_v12  ;;  %1803 = vmatpush.bf16.msra.mxu1 %v1792_v12 }
 0x1f7   : > { %1303 = vmatpush.bf16.msra.mxu0 %v1791_v13  ;;  %1804 = vmatpush.bf16.msra.mxu1 %v1791_v13 }
 0x1fa   : > { %1781 = vmatmul.msk.bf16.vlgmr.msra.gmra.mxu0 %vm1285_vm3, %v1789_v14  ;;  %1782 = vmatmul.msk.bf16.vlgmr.msra.gmra.mxu1 %vm1285_vm3, %v1790_v15  ;;  %v1232_v27 = vpop.permute.xlu1 %1231 }
 0x277   : > { %v1305_v19 = vpop.f32.mrf.mxu0  ;;  %v1310_v20 = vpop.f32.mrf.mxu1 }
 0x278   : > { %v1306_v21 = vadd.f32 %v1305_v19, %v1217_v18  ;;  %v1311_v22 = vadd.f32 %v1310_v20, %v1227_v17 }
 0x27a   : > { %v1315_v23 = vmax.f32 %v1306_v21, 0.0  ;;  %v1317_v24 = vmax.f32 %v1311_v22, 0.0 }
 0x27c   : > { %v1319_v25 = vpack.c.bf16 %v1315_v23, %v1315_v23  ;;  %v1321_v26 = vpack.c.bf16 %v1317_v24, %v1317_v24 }
 0x27e   : > { %1324 = vst.msk [vmem:[%s984_s28] sm:$0xf] %vm1323_vm4, %v1319_v25 }
 0x27f   : > { %1326 = vst.msk [vmem:[%s984_s28 + $0x8] sm:$0xf] %vm1323_vm4, %v1321_v26  ;;  %v1307_v28 = vpop.f32.mrf.mxu0  ;;  %v1312_v29 = vpop.f32.mrf.mxu1 }
 0x280   : > { %v1308_v30 = vadd.f32 %v1307_v28, %v1222_v16  ;;  %v1313_v31 = vadd.f32 %v1312_v29, %v1232_v27 }
 0x282   : > { %v1316_v32 = vmax.f32 %v1308_v30, 0.0  ;;  %v1318_v33 = vmax.f32 %v1313_v31, 0.0 }
 0x284   : > { %v1320_v34 = vpack.c.bf16 %v1316_v32, %v1316_v32  ;;  %v1322_v35 = vpack.c.bf16 %v1318_v33, %v1318_v33 }
 0x286   : > { %1325 = vst.msk [vmem:[%s984_s28 + $0x4] sm:$0xf] %vm1323_vm4, %v1320_v34 }
 0x287   : > { %1327 = vst.msk [vmem:[%s984_s28 + $0xc] sm:$0xf] %vm1323_vm4, %v1322_v35 }
 0x288   : > { %2324 = shalt.err (!%p2321_p0)
}
 0x289   : > { %s2481_s22 = smov 64   ;;  %s2482_s29 = smov 4  }
 0x28a   : > { %1833 = dma.vmem_to_hbm [thread:$0]  (%p2718_p5), %s1344_s25, 256, %s1346_s6, %s1329_s12, %s2481_s22, %s2481_s22, %s2482_s29  }
 0x28b PF: > { %s3232_s16 = sld [smem:[#allocation36_spill]]  ;;  %p1839_p1 = scmp.ge.s32.totalorder %s2475_s26, 2 }
 0x28d   : > { %p1836_p3 = pnand %p1839_p1, %p2727_p2 }
 0x28f   : > { %p1837_p6 = pneg %p1836_p3 }
 0x291   : > { %s1360_s0 = sand.u32 1, %s3232_s16  }
 0x292   : > { %s1361_s23 = scalar_lea.sflag [#allocation5], %s1360_s0 }
 0x293   : > { %2418 = dma.done.wait (%p1837_p6), %s1361_s23, 256  }
 0x294   : > { %2420 = vsyncadd (%p1837_p6), %s1361_s23, 4294967040  ;;  %s48_s26 = sadd.s32 1, %s2475_s26   ;;  %s3235_s29 = sld [smem:[#allocation34_spill]] }
 0x295   : > { %p3076_p7 = scmp.ge.s32.totalorder %s48_s26, 18   ;;  %s3236_s4 = sld [smem:[#allocation45_spill]] }
 0x296   : > { %s3237_s28 = sld [smem:[#allocation35_spill]]  ;;  %s3244_s30 = smov %s2431_s15 }
 0x297   : > { %s3238_s18 = sld [smem:[#allocation44_spill]]  ;;  %s3246_s16 = smov %s2439_s17 }
 0x298   : > { %s3239_s8 = sld [smem:[#allocation43_spill]]  ;;  %s3248_s19 = smov %s2451_s20 }
 0x299   : > { %s3240_s22 = sld [smem:[#allocation39_spill]]  ;;  %s3249_s20 = smov %s2455_s21 }
 0x29a   : > { %s3241_s23 = sld [smem:[#allocation40_spill]]  ;;  %47 = sbr.rel (!%p3076_p7) target bundleno = 38 (0x26), region = 267 }
 0x29b   : > { %s3242_s24 = sld [smem:[#allocation41_spill]]  ;;  %s3245_s15 = smov %s3236_s4 }
 0x29c   : > { %s3243_s25 = sld [smem:[#allocation42_spill]]  ;;  %s3247_s17 = smov %s3237_s28 }
 0x29e   : > { %s3250_s21 = smov %s3239_s8 }
 0x29f   :  { %1367 = vsyncpa [#allocation4], 1 }
 0x2a0   :  { %1369 = vsyncpa [#allocation4 + $0x1], 1 }
 0x2a1   :  { %1370 = vsyncpa [#allocation7], 1 }
 0x2a2   :  { %1372 = vsyncpa [#allocation7 + $0x1], 1 }
 0x2a3   :  { %1373 = vsyncpa [#allocation10], 1 }
 0x2a4   :  { %1375 = vsyncpa [#allocation10 + $0x1], 1 }
 0x2a5   :  { %1376 = vsyncpa [#allocation13], 1 }
 0x2a6   :  { %1378 = vsyncpa [#allocation13 + $0x1], 1 }
 0x2a7   :  { %1379 = vsyncpa [#allocation16], 1 }
 0x2a8   :  { %1381 = vsyncpa [#allocation16 + $0x1], 1 }
 0x2a9   :  { %1382 = vsyncpa [#allocation19], 1 }
 0x2aa   :  { %1384 = vsyncpa [#allocation19 + $0x1], 1 }
 0x2ab   :  { %1385 = vsyncpa [#allocation22], 1 }
 0x2ac   :  { %1387 = vsyncpa [#allocation22 + $0x1], 1 }
 0x2ad   :  { %1388 = vsyncpa [#allocation5], 1 }
 0x2ae   :  { %1390 = vsyncpa [#allocation5 + $0x1], 1 }

</bundles_post_ra>
